<compile_context>
chip_gen: v7x
topology: tpu7x:2x2x1
jax: 0.10.0
libtpu: 0.0.40
codegen_flags: <defaults>
</compile_context>

<pallas_src>
import functools

import jax
import jax.numpy as jnp
from jax.experimental import pallas as pl
from jax.experimental.pallas import tpu as pltpu

KSIZE = 5           # conv kernel size
PAD = 2             # conv padding ("same")
HALO = 2 * PAD      # extra input rows per side so conv2 is exact per tile
C_HID = 256         # out_channels of both convs (fixed by the module)
NEG_SLOPE = 0.01    # nn.LeakyReLU default


def _leaky_relu(x):
    return jnp.where(x > 0, x, NEG_SLOPE * x)


def _encoder_kernel(x_ref, w1_ref, b1_ref, w2_ref, b2_ref, o_ref, h_ref, *,
                    seq_len):
    """One (batch, time-tile) per grid step.

    x_ref : (T_pad + 2*HALO, C_in) bf16  zero-padded input, full time axis
            (grid-invariant per batch element -> DMA'd once per b)
    w1_ref: (KSIZE*C_in, 256)      bf16  tap-major im2col weight for conv1
    b1_ref: (1, 256)               f32
    w2_ref: (KSIZE, 256, 256)      bf16  per-tap weights for conv2
    b2_ref: (1, 256)               f32
    o_ref : (256, TM)              f32   NCW output tile
    h_ref : (TM + 2*PAD, 256)      bf16  VMEM scratch for the hidden activation
    """
    TM = o_ref.shape[1]            # output rows (time) this tile
    TH = TM + 2 * PAD              # hidden rows conv2 needs for this tile
    t0 = pl.multiple_of(pl.program_id(1) * TM, 8)   # absolute output time 0

    # ---- Conv1d #1: single deep-K (5*C_in) matmul on the MXU ---------------
    # hidden times [t0-PAD, t0+TM+PAD) need x times [t0-HALO, t0+TM+HALO),
    # i.e. rows [t0, t0 + TM + 2*HALO) of the HALO-shifted, zero-padded input.
    xw = x_ref[pl.ds(t0, TM + 2 * HALO), :]                    # (TM+8, C_in) bf16
    x_cat = jnp.concatenate([xw[k:k + TH, :] for k in range(KSIZE)], axis=1)
    h = jnp.dot(x_cat, w1_ref[...], preferred_element_type=jnp.float32)
    h = _leaky_relu(h + b1_ref[...])                           # (TH, 256) f32

    # Hidden activation lives in VMEM scratch (bf16) for conv2's shifted reads.
    h_ref[...] = h.astype(jnp.bfloat16)

    # Hidden rows outside the real sequence [0, seq_len) must be ZERO for
    # conv2 (PyTorch pads h with zeros, not with conv1(zero-padded x)).
    # Only boundary tiles need this; interior tiles skip the masking pass.
    @pl.when(jnp.logical_or(t0 < PAD, t0 + TM + PAD > seq_len))
    def _():
        t_h = t0 - PAD + jax.lax.broadcasted_iota(jnp.int32, (TH, 1), 0)
        keep = jnp.logical_and(t_h >= 0, t_h < seq_len)
        hv = h_ref[...]
        h_ref[...] = jnp.where(keep, hv, jnp.zeros_like(hv))

    # ---- Conv1d #2: 5 accumulating K=256 MXU dots over shifted h slices ----
    o = jnp.dot(h_ref[0:TM, :], w2_ref[0],
                preferred_element_type=jnp.float32)
    for k in range(1, KSIZE):
        o += jnp.dot(h_ref[k:k + TM, :], w2_ref[k],
                     preferred_element_type=jnp.float32)
    o = _leaky_relu(o + b2_ref[...])                           # (TM, 256) f32

    # Emit NCW directly: (TM, 256) -> (256, TM) on the XLU (free under MXU).
    o_ref[...] = o.T


def encoder_forward(x_ncw, w1, b1, w2, b2, *, tile_t=2048):
    """HooliGAN Encoder forward.

    x_ncw: (B, C_in, T) f32 (PyTorch NCW layout)
    w1: (256, C_in, 5), b1: (256,), w2: (256, 256, 5), b2: (256,)
    returns (B, 256, T) f32, matching nn.Conv1d/LeakyReLU semantics.
    """
    B, C_in, T = x_ncw.shape

    # Time-tile: single tile (multiple of 8) for short sequences, otherwise a
    # multiple of 128 so the NCW output tile's lane dim stays store-dense and
    # satisfies the (8,128) block constraint.
    if T <= tile_t:
        TM = -(-T // 8) * 8
    else:
        TM = max(128, (tile_t // 128) * 128)
    nT = -(-T // TM)
    T_pad = nT * TM

    # NCW -> (B, T, C) in bf16 (MXU operand dtype), zero-padded by HALO on the
    # left and HALO + (T_pad - T) on the right.  No halo gather / duplication:
    # each tile slices its own window in-kernel.
    x_btc = jnp.transpose(x_ncw, (0, 2, 1)).astype(jnp.bfloat16)
    x_padded = jnp.pad(x_btc, ((0, 0), (HALO, HALO + T_pad - T), (0, 0)))

    # Tap-major weights, bf16 for the MXU (accumulation stays f32).
    w1_flat = (jnp.transpose(w1, (2, 1, 0))         # (K, C_in, 256)
               .reshape(KSIZE * C_in, C_HID).astype(jnp.bfloat16))
    w2_taps = jnp.transpose(w2, (2, 1, 0)).astype(jnp.bfloat16)   # (K, 256, 256)
    b1_2d = b1.reshape(1, C_HID).astype(jnp.float32)
    b2_2d = b2.reshape(1, C_HID).astype(jnp.float32)

    kernel = functools.partial(_encoder_kernel, seq_len=T)

    out = pl.pallas_call(
        kernel,
        out_shape=jax.ShapeDtypeStruct((B, C_HID, T_pad), jnp.float32),
        grid_spec=pltpu.PrefetchScalarGridSpec(
            num_scalar_prefetch=0,
            grid=(B, nT),
            in_specs=[
                # Full (zero-padded) time axis, grid-invariant across t:
                # Pallas keeps it resident and DMAs it once per batch element.
                # TODO(synk): for extremely long sequences (VMEM ~ 2*T*C_in*2 B)
                # switch this to an Element-indexed halo'd window per tile.
                pl.BlockSpec((pl.Squeezed(), T_pad + 2 * HALO, C_in),
                             lambda b, t: (b, 0, 0)),
                pl.BlockSpec((KSIZE * C_in, C_HID), lambda b, t: (0, 0)),
                pl.BlockSpec((1, C_HID), lambda b, t: (0, 0)),
                pl.BlockSpec((KSIZE, C_HID, C_HID), lambda b, t: (0, 0, 0)),
                pl.BlockSpec((1, C_HID), lambda b, t: (0, 0)),
            ],
            # NCW output tile straight from the kernel: (256, TM) at (b, :, t*TM).
            out_specs=pl.BlockSpec((pl.Squeezed(), C_HID, TM),
                                   lambda b, t: (b, 0, t)),
            scratch_shapes=[pltpu.VMEM((TM + 2 * PAD, C_HID), jnp.bfloat16)],
        ),
        compiler_params=pltpu.CompilerParams(
            dimension_semantics=("parallel", "parallel"),
            vmem_limit_bytes=32 * 1024 * 1024),
    )(x_padded, w1_flat, b1_2d, w2_taps, b2_2d)

    # Output is already NCW; just drop the padded time tail (no-op if T==T_pad).
    return out[:, :, :T]


def _reference_forward(x_ncw, w1, b1, w2, b2):
    """Pure-JAX f32 reference (nn.Conv1d semantics) for correctness check."""
    def conv1d(x_btc, w, b):           # x_btc: (B, T, Cin), w: (Cout, Cin, K)
        B, T, _ = x_btc.shape
        xp = jnp.pad(x_btc, ((0, 0), (PAD, PAD), (0, 0)))
        wt = jnp.transpose(w, (2, 1, 0))            # (K, Cin, Cout)
        out = jnp.zeros((B, T, w.shape[0]), jnp.float32)
        for k in range(KSIZE):
            out = out + jnp.einsum('btc,co->bto', xp[:, k:k + T, :], wt[k])
        return out + b[None, None, :]

    x_btc = jnp.transpose(x_ncw, (0, 2, 1)).astype(jnp.float32)
    h = _leaky_relu(conv1d(x_btc, w1, b1))
    o = _leaky_relu(conv1d(h, w2, b2))
    return jnp.transpose(o, (0, 2, 1))


if __name__ == "__main__":
    # Small, deterministic shapes: batch=2, num_mels=7 (=> C_in=8), seq T=16.
    B, NUM_MELS, T = 2, 7, 16
    C_IN = NUM_MELS + 1

    key = jax.random.PRNGKey(0)
    kx, kw1, kb1, kw2, kb2 = jax.random.split(key, 5)

    x = jax.random.normal(kx, (B, C_IN, T), dtype=jnp.float32)
    w1 = 0.05 * jax.random.normal(kw1, (C_HID, C_IN, KSIZE), dtype=jnp.float32)
    b1 = 0.01 * jax.random.normal(kb1, (C_HID,), dtype=jnp.float32)
    w2 = 0.05 * jax.random.normal(kw2, (C_HID, C_HID, KSIZE), dtype=jnp.float32)
    b2 = 0.01 * jax.random.normal(kb2, (C_HID,), dtype=jnp.float32)

    out = encoder_forward(x, w1, b1, w2, b2)
    jax.block_until_ready(out)

    ref = _reference_forward(x, w1, b1, w2, b2)
    assert out.shape == (B, C_HID, T)
    # bf16 matmul operands with f32 accumulation -> loosened tolerance vs f32.
    assert jnp.allclose(out, ref, atol=2e-2, rtol=2e-2)

    print("KERNEL_OK")
</pallas_src>

<mosaic_0001>
module attributes {stable_mosaic.version = 11 : i64} {
  func.func @_encoder_kernel(%arg0: i32, %arg1: i32, %arg2: memref<1x24x8xbf16, #tpu.memory_space<vmem>>, %arg3: memref<40x256xbf16, #tpu.memory_space<vmem>>, %arg4: memref<1x256xf32, #tpu.memory_space<vmem>>, %arg5: memref<5x256x256xbf16, #tpu.memory_space<vmem>>, %arg6: memref<1x256xf32, #tpu.memory_space<vmem>>, %arg7: memref<1x256x16xf32, #tpu.memory_space<vmem>>, %arg8: memref<20x256xbf16, #tpu.memory_space<vmem>>) attributes {dimension_semantics = [#tpu.dimension_semantics<parallel>, #tpu.dimension_semantics<parallel>], iteration_bounds = array<i64: 2, 1>, scalar_prefetch = 0 : i64, scratch_operands = 1 : i64, tpu.core_type = #tpu.core_type<tc>, window_params = [{transform_indices = @transform_0, window_bounds = array<i64: 1, 24, 8>}, {pipeline_mode = #tpu.pipeline_mode<synchronous>, transform_indices = @transform_1, window_bounds = array<i64: 40, 256>}, {pipeline_mode = #tpu.pipeline_mode<synchronous>, transform_indices = @transform_2, window_bounds = array<i64: 1, 256>}, {pipeline_mode = #tpu.pipeline_mode<synchronous>, transform_indices = @transform_3, window_bounds = array<i64: 5, 256, 256>}, {pipeline_mode = #tpu.pipeline_mode<synchronous>, transform_indices = @transform_4, window_bounds = array<i64: 1, 256>}, {transform_indices = @transform_5, window_bounds = array<i64: 1, 256, 16>}]} {
    %c16_i32 = arith.constant 16 : i32
    %0 = arith.muli %arg1, %c16_i32 : i32
    %1 = tpu.assume_multiple %0, 8 : i32
    %c0 = arith.constant 0 : index
    %2 = arith.index_cast %1 : i32 to index
    %c0_0 = arith.constant 0 : index
    %3 = vector.load %arg2[%c0, %2, %c0_0] : memref<1x24x8xbf16, #tpu.memory_space<vmem>>, vector<1x24x8xbf16>
    %4 = vector.shape_cast %3 : vector<1x24x8xbf16> to vector<24x8xbf16>
    %5 = vector.extract_strided_slice %4 {offsets = [0, 0], sizes = [20, 8], strides = [1, 1]} : vector<24x8xbf16> to vector<20x8xbf16>
    %6 = vector.extract_strided_slice %4 {offsets = [1, 0], sizes = [20, 8], strides = [1, 1]} : vector<24x8xbf16> to vector<20x8xbf16>
    %7 = vector.extract_strided_slice %4 {offsets = [2, 0], sizes = [20, 8], strides = [1, 1]} : vector<24x8xbf16> to vector<20x8xbf16>
    %8 = vector.extract_strided_slice %4 {offsets = [3, 0], sizes = [20, 8], strides = [1, 1]} : vector<24x8xbf16> to vector<20x8xbf16>
    %9 = vector.extract_strided_slice %4 {offsets = [4, 0], sizes = [20, 8], strides = [1, 1]} : vector<24x8xbf16> to vector<20x8xbf16>
    %10 = tpu.concatenate %5, %6, %7, %8, %9 in 1 : vector<20x8xbf16>, vector<20x8xbf16>, vector<20x8xbf16>, vector<20x8xbf16>, vector<20x8xbf16> -> vector<20x40xbf16>
    %c0_1 = arith.constant 0 : index
    %c0_2 = arith.constant 0 : index
    %11 = vector.load %arg3[%c0_1, %c0_2] : memref<40x256xbf16, #tpu.memory_space<vmem>>, vector<40x256xbf16>
    %cst = arith.constant dense<0.000000e+00> : vector<20x256xf32>
    %12 = tpu.matmul %10, %11, %cst {dimension_numbers = #tpu.dot_dimension_numbers<[1], [0], [0], [1], [0, 0, 1, 1], [], []>} : vector<20x40xbf16>, vector<40x256xbf16>, vector<20x256xf32> -> vector<20x256xf32>
    %c0_3 = arith.constant 0 : index
    %c0_4 = arith.constant 0 : index
    %13 = vector.load %arg4[%c0_3, %c0_4] : memref<1x256xf32, #tpu.memory_space<vmem>>, vector<1x256xf32>
    %14 = vector.broadcast %13 : vector<1x256xf32> to vector<20x256xf32>
    %15 = arith.addf %12, %14 : vector<20x256xf32>
    %cst_5 = arith.constant 0.000000e+00 : f32
    %16 = vector.broadcast %cst_5 : f32 to vector<20x256xf32>
    %17 = arith.cmpf ogt, %15, %16 : vector<20x256xf32>
    %cst_6 = arith.constant 0.00999999977 : f32
    %18 = vector.broadcast %cst_6 : f32 to vector<20x256xf32>
    %19 = arith.mulf %18, %15 : vector<20x256xf32>
    %20 = arith.select %17, %15, %19 : vector<20x256xi1>, vector<20x256xf32>
    %21 = arith.truncf %20 : vector<20x256xf32> to vector<20x256xbf16>
    %c0_7 = arith.constant 0 : index
    %c0_8 = arith.constant 0 : index
    %22 = vector.load %arg8[%c0_7, %c0_8] : memref<20x256xbf16, #tpu.memory_space<vmem>>, vector<20x256xbf16>
    tpu.vector_store %arg8[%c0_7, %c0_8], %21 {strides = array<i32>} : memref<20x256xbf16, #tpu.memory_space<vmem>>, vector<20x256xbf16>,
    %c2_i32 = arith.constant 2 : i32
    %23 = arith.cmpi slt, %1, %c2_i32 : i32
    %c16_i32_9 = arith.constant 16 : i32
    %24 = arith.addi %1, %c16_i32_9 : i32
    %c2_i32_10 = arith.constant 2 : i32
    %25 = arith.addi %24, %c2_i32_10 : i32
    %c16_i32_11 = arith.constant 16 : i32
    %26 = arith.cmpi sgt, %25, %c16_i32_11 : i32
    %27 = arith.ori %23, %26 : i1
    %28 = arith.extui %27 : i1 to i32
    %c0_i32 = arith.constant 0 : i32
    %29 = arith.cmpi ne, %28, %c0_i32 : i32
    scf.if %29 {
      %c2_i32_45 = arith.constant 2 : i32
      %66 = arith.subi %1, %c2_i32_45 : i32
      %67 = tpu.iota {dimensions = array<i32: 0>} : vector<20x1xi32>
      %68 = vector.broadcast %66 : i32 to vector<20x1xi32>
      %69 = arith.addi %68, %67 : vector<20x1xi32>
      %c0_i32_46 = arith.constant 0 : i32
      %70 = vector.broadcast %c0_i32_46 : i32 to vector<20x1xi32>
      %71 = arith.cmpi sge, %69, %70 : vector<20x1xi32>
      %c16_i32_47 = arith.constant 16 : i32
      %72 = vector.broadcast %c16_i32_47 : i32 to vector<20x1xi32>
      %73 = arith.cmpi slt, %69, %72 : vector<20x1xi32>
      %74 = arith.andi %71, %73 : vector<20x1xi1>
      %c0_48 = arith.constant 0 : index
      %c0_49 = arith.constant 0 : index
      %75 = vector.load %arg8[%c0_48, %c0_49] : memref<20x256xbf16, #tpu.memory_space<vmem>>, vector<20x256xbf16>
      %cst_50 = arith.constant 0.000000e+00 : bf16
      %76 = vector.broadcast %cst_50 : bf16 to vector<20x256xbf16>
      %77 = vector.shape_cast %74 : vector<20x1xi1> to vector<20x1xi1>
      %78 = vector.broadcast %77 : vector<20x1xi1> to vector<20x256xi1>
      %79 = arith.select %78, %75, %76 : vector<20x256xi1>, vector<20x256xbf16>
      %c0_51 = arith.constant 0 : index
      %c0_52 = arith.constant 0 : index
      %80 = vector.load %arg8[%c0_51, %c0_52] : memref<20x256xbf16, #tpu.memory_space<vmem>>, vector<20x256xbf16>
      tpu.vector_store %arg8[%c0_51, %c0_52], %79 {strides = array<i32>} : memref<20x256xbf16, #tpu.memory_space<vmem>>, vector<20x256xbf16>,
    } else {
    }
    %c0_12 = arith.constant 0 : index
    %c0_13 = arith.constant 0 : index
    %30 = vector.load %arg8[%c0_12, %c0_13] : memref<20x256xbf16, #tpu.memory_space<vmem>>, vector<16x256xbf16>
    %c0_14 = arith.constant 0 : index
    %c0_15 = arith.constant 0 : index
    %c0_16 = arith.constant 0 : index
    %31 = vector.load %arg5[%c0_14, %c0_15, %c0_16] : memref<5x256x256xbf16, #tpu.memory_space<vmem>>, vector<1x256x256xbf16>
    %32 = vector.shape_cast %31 : vector<1x256x256xbf16> to vector<256x256xbf16>
    %cst_17 = arith.constant dense<0.000000e+00> : vector<16x256xf32>
    %33 = tpu.matmul %30, %32, %cst_17 {dimension_numbers = #tpu.dot_dimension_numbers<[1], [0], [0], [1], [0, 0, 1, 1], [], []>} : vector<16x256xbf16>, vector<256x256xbf16>, vector<16x256xf32> -> vector<16x256xf32>
    %c1 = arith.constant 1 : index
    %c0_18 = arith.constant 0 : index
    %34 = vector.load %arg8[%c1, %c0_18] : memref<20x256xbf16, #tpu.memory_space<vmem>>, vector<16x256xbf16>
    %c1_19 = arith.constant 1 : index
    %c0_20 = arith.constant 0 : index
    %c0_21 = arith.constant 0 : index
    %35 = vector.load %arg5[%c1_19, %c0_20, %c0_21] : memref<5x256x256xbf16, #tpu.memory_space<vmem>>, vector<1x256x256xbf16>
    %36 = vector.shape_cast %35 : vector<1x256x256xbf16> to vector<256x256xbf16>
    %cst_22 = arith.constant dense<0.000000e+00> : vector<16x256xf32>
    %37 = tpu.matmul %34, %36, %cst_22 {dimension_numbers = #tpu.dot_dimension_numbers<[1], [0], [0], [1], [0, 0, 1, 1], [], []>} : vector<16x256xbf16>, vector<256x256xbf16>, vector<16x256xf32> -> vector<16x256xf32>
    %38 = arith.addf %33, %37 : vector<16x256xf32>
    %c2 = arith.constant 2 : index
    %c0_23 = arith.constant 0 : index
    %39 = vector.load %arg8[%c2, %c0_23] : memref<20x256xbf16, #tpu.memory_space<vmem>>, vector<16x256xbf16>
    %c2_24 = arith.constant 2 : index
    %c0_25 = arith.constant 0 : index
    %c0_26 = arith.constant 0 : index
    %40 = vector.load %arg5[%c2_24, %c0_25, %c0_26] : memref<5x256x256xbf16, #tpu.memory_space<vmem>>, vector<1x256x256xbf16>
    %41 = vector.shape_cast %40 : vector<1x256x256xbf16> to vector<256x256xbf16>
    %cst_27 = arith.constant dense<0.000000e+00> : vector<16x256xf32>
    %42 = tpu.matmul %39, %41, %cst_27 {dimension_numbers = #tpu.dot_dimension_numbers<[1], [0], [0], [1], [0, 0, 1, 1], [], []>} : vector<16x256xbf16>, vector<256x256xbf16>, vector<16x256xf32> -> vector<16x256xf32>
    %43 = arith.addf %38, %42 : vector<16x256xf32>
    %c3 = arith.constant 3 : index
    %c0_28 = arith.constant 0 : index
    %44 = vector.load %arg8[%c3, %c0_28] : memref<20x256xbf16, #tpu.memory_space<vmem>>, vector<16x256xbf16>
    %c3_29 = arith.constant 3 : index
    %c0_30 = arith.constant 0 : index
    %c0_31 = arith.constant 0 : index
    %45 = vector.load %arg5[%c3_29, %c0_30, %c0_31] : memref<5x256x256xbf16, #tpu.memory_space<vmem>>, vector<1x256x256xbf16>
    %46 = vector.shape_cast %45 : vector<1x256x256xbf16> to vector<256x256xbf16>
    %cst_32 = arith.constant dense<0.000000e+00> : vector<16x256xf32>
    %47 = tpu.matmul %44, %46, %cst_32 {dimension_numbers = #tpu.dot_dimension_numbers<[1], [0], [0], [1], [0, 0, 1, 1], [], []>} : vector<16x256xbf16>, vector<256x256xbf16>, vector<16x256xf32> -> vector<16x256xf32>
    %48 = arith.addf %43, %47 : vector<16x256xf32>
    %c4 = arith.constant 4 : index
    %c0_33 = arith.constant 0 : index
    %49 = vector.load %arg8[%c4, %c0_33] : memref<20x256xbf16, #tpu.memory_space<vmem>>, vector<16x256xbf16>
    %c4_34 = arith.constant 4 : index
    %c0_35 = arith.constant 0 : index
    %c0_36 = arith.constant 0 : index
    %50 = vector.load %arg5[%c4_34, %c0_35, %c0_36] : memref<5x256x256xbf16, #tpu.memory_space<vmem>>, vector<1x256x256xbf16>
    %51 = vector.shape_cast %50 : vector<1x256x256xbf16> to vector<256x256xbf16>
    %cst_37 = arith.constant dense<0.000000e+00> : vector<16x256xf32>
    %52 = tpu.matmul %49, %51, %cst_37 {dimension_numbers = #tpu.dot_dimension_numbers<[1], [0], [0], [1], [0, 0, 1, 1], [], []>} : vector<16x256xbf16>, vector<256x256xbf16>, vector<16x256xf32> -> vector<16x256xf32>
    %53 = arith.addf %48, %52 : vector<16x256xf32>
    %c0_38 = arith.constant 0 : index
    %c0_39 = arith.constant 0 : index
    %54 = vector.load %arg6[%c0_38, %c0_39] : memref<1x256xf32, #tpu.memory_space<vmem>>, vector<1x256xf32>
    %55 = vector.broadcast %54 : vector<1x256xf32> to vector<16x256xf32>
    %56 = arith.addf %53, %55 : vector<16x256xf32>
    %cst_40 = arith.constant 0.000000e+00 : f32
    %57 = vector.broadcast %cst_40 : f32 to vector<16x256xf32>
    %58 = arith.cmpf ogt, %56, %57 : vector<16x256xf32>
    %cst_41 = arith.constant 0.00999999977 : f32
    %59 = vector.broadcast %cst_41 : f32 to vector<16x256xf32>
    %60 = arith.mulf %59, %56 : vector<16x256xf32>
    %61 = arith.select %58, %56, %60 : vector<16x256xi1>, vector<16x256xf32>
    %62 = tpu.transpose %61, [1, 0] : vector<16x256xf32> -> vector<256x16xf32>
    %c0_42 = arith.constant 0 : index
    %c0_43 = arith.constant 0 : index
    %c0_44 = arith.constant 0 : index
    %63 = vector.load %arg7[%c0_42, %c0_43, %c0_44] : memref<1x256x16xf32, #tpu.memory_space<vmem>>, vector<1x256x16xf32>
    %64 = vector.shape_cast %63 : vector<1x256x16xf32> to vector<256x16xf32>
    %65 = vector.shape_cast %62 : vector<256x16xf32> to vector<1x256x16xf32>
    tpu.vector_store %arg7[%c0_42, %c0_43, %c0_44], %65 {strides = array<i32>} : memref<1x256x16xf32, #tpu.memory_space<vmem>>, vector<1x256x16xf32>,
    return
  }
  func.func @transform_0(%arg0: i32, %arg1: i32) -> (i32, i32, i32) {
    %c0_i32 = arith.constant 0 : i32
    %c0_i32_0 = arith.constant 0 : i32
    %c0_i32_1 = arith.constant 0 : i32
    return %arg0, %c0_i32, %c0_i32_0 : i32, i32, i32
  }
  func.func @transform_1(%arg0: i32, %arg1: i32) -> (i32, i32) {
    %c0_i32 = arith.constant 0 : i32
    %c0_i32_0 = arith.constant 0 : i32
    %c0_i32_1 = arith.constant 0 : i32
    return %c0_i32, %c0_i32_0 : i32, i32
  }
  func.func @transform_2(%arg0: i32, %arg1: i32) -> (i32, i32) {
    %c0_i32 = arith.constant 0 : i32
    %c0_i32_0 = arith.constant 0 : i32
    %c0_i32_1 = arith.constant 0 : i32
    return %c0_i32, %c0_i32_0 : i32, i32
  }
  func.func @transform_3(%arg0: i32, %arg1: i32) -> (i32, i32, i32) {
    %c0_i32 = arith.constant 0 : i32
    %c0_i32_0 = arith.constant 0 : i32
    %c0_i32_1 = arith.constant 0 : i32
    %c0_i32_2 = arith.constant 0 : i32
    return %c0_i32, %c0_i32_0, %c0_i32_1 : i32, i32, i32
  }
  func.func @transform_4(%arg0: i32, %arg1: i32) -> (i32, i32) {
    %c0_i32 = arith.constant 0 : i32
    %c0_i32_0 = arith.constant 0 : i32
    %c0_i32_1 = arith.constant 0 : i32
    return %c0_i32, %c0_i32_0 : i32, i32
  }
  func.func @transform_5(%arg0: i32, %arg1: i32) -> (i32, i32, i32) {
    %c0_i32 = arith.constant 0 : i32
    %c0_i32_0 = arith.constant 0 : i32
    return %arg0, %c0_i32, %arg1 : i32, i32, i32
  }
}

</mosaic_0001>

<bundles_post_ra>
// kernel: tpu_custom_call.1
= control target key start
LH: loop header
LB: loop body
LE: loop exit
PB: predicated region body
PF: predicated region fallthrough
CT: control target
= control target key end

     0   :  { %10 = vsyncpa [#allocation4], 0  ;;  %s3004_s0 = inlined_call_operand.vmem [shape: bf16[2,24,8], index: 0, kind: input, shape index: {}]   ;;  %s3005_s1 = inlined_call_operand.hbm [shape: bf16[40,256], index: 1, kind: input, shape index: {}]   ;;  %s3006_s2 = inlined_call_operand.vmem [shape: f32[1,256], index: 2, kind: input, shape index: {}]   ;;  %s3007_s3 = inlined_call_operand.hbm [shape: bf16[5,256,256], index: 3, kind: input, shape index: {}]   ;;  %s3008_s4 = inlined_call_operand.vmem [shape: f32[1,256], index: 4, kind: input, shape index: {}]   ;;  %s3009_s5 = inlined_call_operand.vmem [shape: f32[2,256,16], index: 5, kind: output, shape index: {}]  }
   0x1   :  { %11 = vsyncpa [#allocation6], 0  ;;  %s2735_s18 = smov 0   ;;  %s2737_s19 = smov 0  }
   0x2   :  { %s2739_s20 = smov 0  }
   0x3 LB: > { %s2080_s21 = sadd.s32 4294967295, %s2693_s20   ;;  %s29_s22 = sadd.s32 1, %s2689_s19  ;;  %s2693_s20 = sphi %s2739_s20, %s17_s20   ;;  %s2689_s19 = sphi %s2737_s19, %s3019_s19   ;;  %s2685_s18 = sphi %s2735_s18, %s3018_s18  }
   0x4   : > { %p31_p0 = scmp.ge.s32.totalorder %s29_s22, 2  ;;  %p2082_p1 = scmp.ge.s32.totalorder %s2693_s20, 1 }
   0x5   : > { %p172_p2 = scmp.lt.s32.totalorder %s2693_s20, 3  ;;  %p2760_p4 = scmp.eq.s32.totalorder %s2080_s21, 0 }
   0x6   : > { %s3021_s22 = smov (%p31_p0, %s29_s22), 0  ;;  %s2695_s25 = smov [#allocation3]  }
   0x7   : > { %p2756_p3 = pnand %p2082_p1, %p172_p2  ;;  %s184_s26 = sshll.u32 %s2695_s25, 4  ;;  %s185_s26 = int_to_ptr.vmem [resolvable:$true] %s184_s26 }
   0x8   : > { %s3014_s24 = scalar_select %p2760_p4, 1, 0 }
   0x9   : > { %s3013_s23 = scalar_select %p2756_p3, 1, 0 }
   0xa   : > { %p2307_p5 = pneg %p2756_p3  ;;  %s2696_s28 = smov [#allocation5]  }
   0xb   : > { %s200_s29 = sshll.u32 %s2696_s28, 4  ;;  %s2607_s7 = scalar_lea.hbm %s3005_s1, 640  ;;  %s2772_s29 = int_to_ptr.vmem [resolvable:$true] %s200_s29 }
   0xc   : > { %p2768_p6 = pnand %p2760_p4, %p2307_p5  ;;  %p2608_p7 = scmp.ne.s32.totalorder %s3005_s1, %s2607_s7 }
   0xd   : > { %p2614_p11 = scmp.lt.u32.totalorder %s2607_s7, %s3005_s1 }
   0xe   : > { %p2609_p8 = pneg %p2768_p6 }
  0x10   : > { %p2610_p9 = pnand %p2609_p8, %p2608_p7 }
  0x12   : > { %p2611_p10 = pneg %p2610_p9 }
  0x14   : > { %p2616_p12 = pnand %p2614_p11, %p2611_p10 }
  0x16   : > { %2619 = shalt.err (!%p2616_p12)
}
  0x17   : > { %s2620_s12 = scalar_lea.vmem %s185_s26, 640  ;;  %p2628_p2 = scmp.lt.s32.totalorder %s185_s26, %s185_s26 }
  0x18   : > { %p2621_p13 = scmp.ne.s32.totalorder %s185_s26, %s2620_s12  ;;  %p2629_p5 = scmp.lt.s32.totalorder %s2620_s12, %s2620_s12 }
  0x1a   : > { %p2623_p0 = pnand %p2621_p13, %p2609_p8  ;;  %p2630_p4 = por %p2629_p5, %p2628_p2 }
  0x1c   : > { %p2624_p1 = pneg %p2623_p0 }
  0x1e   : > { %p2631_p3 = pnand %p2630_p4, %p2624_p1 }
  0x20   : > { %2634 = shalt.err (!%p2631_p3)
}
  0x21   : > { %s2697_s13 = smov 128   ;;  %s2698_s14 = smov 8  }
  0x22   : > { %2310 = dma.hbm_to_vmem [thread:$0]  (!%p2768_p6), %s3005_s1, 640, %s185_s26, [#allocation4], %s2697_s13, %s2697_s13, %s2698_s14  }
  0x23   : > { %s2635_s25 = scalar_lea.hbm %s3007_s3, 20480 }
  0x24   : > { %p2636_p7 = scmp.ne.s32.totalorder %s3007_s3, %s2635_s25  ;;  %p2642_p9 = scmp.lt.u32.totalorder %s2635_s25, %s3007_s3 }
  0x26   : > { %p2638_p3 = pnand %p2636_p7, %p2609_p8 }
  0x28   : > { %p2639_p4 = pneg %p2638_p3 }
  0x2a   : > { %p2644_p10 = pnand %p2642_p9, %p2639_p4 }
  0x2c   : > { %2647 = shalt.err (!%p2644_p10)
}
  0x2d   : > { %s2648_s26 = scalar_lea.vmem %s2772_s29, 20480  ;;  %p2656_p0 = scmp.lt.s32.totalorder %s2772_s29, %s2772_s29 }
  0x2e   : > { %p2649_p11 = scmp.ne.s32.totalorder %s2772_s29, %s2648_s26  ;;  %p2657_p1 = scmp.lt.s32.totalorder %s2648_s26, %s2648_s26 }
  0x30   : > { %p2651_p12 = pnand %p2649_p11, %p2609_p8  ;;  %p2658_p2 = por %p2657_p1, %p2656_p0 }
  0x32   : > { %p2652_p13 = pneg %p2651_p12 }
  0x34   : > { %p2659_p5 = pnand %p2658_p2, %p2652_p13 }
  0x36   : > { %2662 = shalt.err (!%p2659_p5)
}
  0x37   : > { %2313 = dma.hbm_to_vmem [thread:$0]  (!%p2768_p6), %s3007_s3, 20480, %s2772_s29, [#allocation6], %s2697_s13, %s2697_s13, %s2698_s14  }
  0x38   : > { %p3016_p7 = scmp.ne.s32.totalorder %s3013_s23, 0 }
  0x39   : > { %p3017_p3 = scmp.ne.s32.totalorder (!%p3016_p7), %s3014_s24, 0 }
  0x3a   : > { %227 = sbr.rel (%p3016_p7) target bundleno = 993 (0x3e1), region = 40 }
  0x41   : > { %2676 = dma.done.wait (%p3017_p3), [#allocation4], 640  }
  0x42   : > { %2678 = vsyncadd (%p3017_p3), [#allocation4], 4294966656 }
  0x43   : > { %2680 = dma.done.wait (%p3017_p3), [#allocation6], 20480  }
  0x44   : > { %2682 = vsyncadd (%p3017_p3), [#allocation6], 4294946816  ;;  %p262_p8 = scmp.lt.s32.totalorder %s2685_s18, 1  ;;  %vm292_vm0 = vsmask.f32 7424  ;;  %v2699_v8 = vmov 0  }
  0x45   : > { %v2355_v2 = vld [vmem:[#allocation3 + $0x4] ss:$8 sps:$4 sm:$0xff]   ;;  %v2357_v3 = vld [vmem:[#allocation3] ss:$8 sps:$4 sm:$0xff]   ;;  %446 = vmatprep.mubr.bf16.mxu0 %v2699_v8  ;;  %vm320_vm1 = vsmask.f32 6400 }
  0x46   : > { %s3023_s18 = smov (!%p262_p8, %s2685_s18), 1  ;;  %vm312_vm2 = vcmask 1046528   ;;  %414 = vmatprep.subr.bf16.mxu0 %v2355_v2  ;;  %v2358_v9 = vld [vmem:[#allocation3 + $0x14] ss:$8 sps:$4 sm:$0xff]   ;;  %vm407_vm3 = vcmask 1043456   ;;  %v364_v18 = vld [vmem:[#allocation3 + $0x20] sm:$0xff] }
  0x47   : > { %s2298_s23 = smul.u32 12, %s3023_s18  ;;  %415 = vmatpush1.bf16.msra.mxu0 %v2357_v3  ;;  %v2360_v14 = vld [vmem:[#allocation3 + $0x10] ss:$8 sps:$4 sm:$0xff]   ;;  %v2099_v22 = vcombine.high %v364_v18, %v364_v18  ;;  %v2098_v26 = vcombine.low %v364_v18, %v364_v18  ;;  %vm332_vm4 = vcmask 1045504   ;;  %s2700_s24 = smov 8   ;;  %vm340_vm5 = vcmask 64512  }
  0x48   : > { %416 = vmatprep.subr.bf16.mxu0 %v2358_v9  ;;  %s2701_s11 = smov 24   ;;  %v2363_v32 = vld [vmem:[#allocation5 + $0x204] ss:$8 sps:$4 sm:$0xff]   ;;  %v2365_v33 = vld [vmem:[#allocation5 + $0x200] ss:$8 sps:$4 sm:$0xff]   ;;  %s2702_s12 = smov 16  }
  0x49   : > { %s266_s10 = scalar_lea.vmem %s3004_s0, %s2298_s23  ;;  %v409_v29 = vsel %vm407_vm3, %v2098_v26, 0  ;;  %v2368_v34 = vld [vmem:[#allocation5 + $0x104] ss:$8 sps:$4 sm:$0xff]   ;;  %v2369_v35 = vld [vmem:[#allocation5 + $0x214] ss:$8 sps:$4 sm:$0xff]   ;;  %1271 = vmatprep.subr.bf16.mxu1 %v2363_v32  ;;  %s2703_s13 = smov 32  }
  0x4a   : > { %v2839_v0 = vld [vmem:[%s266_s10] sm:$0xff]   ;;  %v2841_v1 = vld [vmem:[%s266_s10 + $0x8] ss:$0 sps:$4 sm:$0xff]   ;;  %1272 = vmatpush1.bf16.msra.mxu1 %v2365_v33  ;;  %v2371_v37 = vld [vmem:[#allocation5 + $0x210] ss:$8 sps:$4 sm:$0xff]   ;;  %vm345_vm6 = vcmask 130048  }
  0x4b   : > { %v294_v4 = vshrl.u32 %v2839_v0, 16  ;;  %v296_v5 = vshll.u32 %v2839_v0, 16  ;;  %v301_v6 = vshll.u32 %v2841_v1, 16  ;;  %v305_v7 = vshrl.u32 %v2841_v1, 16  ;;  %417 = vmatpush1.bf16.msra.mxu0 %v2360_v14  ;;  %1273 = vmatprep.subr.bf16.mxu1 %v2369_v35  ;;  %v2375_v38 = vld [vmem:[#allocation5 + $0x224] ss:$8 sps:$4 sm:$0xff]  }
  0x4c   : > { %v313_v17 = vrot.slane %v2839_v0, 1  ;;  %v314_v21 = vrot.slane %v2841_v1, 1  ;;  %v333_v24 = vrot.slane %v2839_v0, 2  ;;  %v334_v25 = vrot.slane %v2841_v1, 2  ;;  %2100 = vmatprep.subr.msk.bf16.mxu0 %vm407_vm3, %v2099_v22  ;;  %v2377_v39 = vld [vmem:[#allocation5 + $0x220] ss:$8 sps:$4 sm:$0xff]  }
  0x4d   : > { %v298_v10 = vrot.slane %v296_v5, 1  ;;  %v303_v11 = vrot.slane %v301_v6, 1  ;;  %v321_v12 = vrot.slane %v294_v4, 1  ;;  %v322_v13 = vrot.slane %v296_v5, 2  ;;  %v2381_v40 = vld [vmem:[#allocation5 + $0x234] ss:$8 sps:$4 sm:$0xff]  }
  0x4e   : > { %v324_v15 = vrot.slane %v305_v7, 1  ;;  %v325_v16 = vrot.slane %v301_v6, 2  ;;  %v315_v30 = vsel %vm312_vm2, %v313_v17, %v314_v21  ;;  %v335_v31 = vsel %vm332_vm4, %v333_v24, %v334_v25  ;;  %1274 = vmatpush1.bf16.msra.mxu1 %v2371_v37  ;;  %v2383_v41 = vld [vmem:[#allocation5 + $0x230] ss:$8 sps:$4 sm:$0xff]   ;;  %v2387_v42 = vld [vmem:[#allocation5 + $0x244] ss:$8 sps:$4 sm:$0xff]  }
  0x4f   : > { %v299_v19 = vor.u32 %v298_v10, %v294_v4  ;;  %v323_v20 = vor.u32 %v322_v13, %v321_v12  ;;  %419 = vmatpush1.bf16.msra.mxu0 %v409_v29  ;;  %v307_v36 = vor.u32 %v305_v7, %v303_v11  ;;  %1275 = vmatprep.subr.bf16.mxu1 %v2375_v38  ;;  %v2389_v43 = vld [vmem:[#allocation5 + $0x240] ss:$8 sps:$4 sm:$0xff]   ;;  %v2393_v44 = vld [vmem:[#allocation5 + $0x254] ss:$8 sps:$4 sm:$0xff]   ;;  %v2395_v45 = vld [vmem:[#allocation5 + $0x250] ss:$8 sps:$4 sm:$0xff]  }
  0x50   : > { %v326_v23 = vor.u32 %v325_v16, %v324_v15  ;;  %816 = vmatprep.subr.bf16.mxu0 %v2368_v34  ;;  %v2399_v46 = vld [vmem:[#allocation5 + $0x264] ss:$8 sps:$4 sm:$0xff]   ;;  %vm350_vm7 = vcmask 195584   ;;  %vm355_vm8 = vcmask 261120   ;;  %vm402_vm9 = vcmask 326656   ;;  %s2278_s21 = sshll.u32 %s3023_s18, 8 }
  0x51   : > { %v304_v27 = vsel %vm292_vm0, %v299_v19, %v303_v11  ;;  %v2366_v53 = vld [vmem:[#allocation5 + $0x100] ss:$8 sps:$4 sm:$0xff]   ;;  %v2374_v55 = vld [vmem:[#allocation5 + $0x114] ss:$8 sps:$4 sm:$0xff]   ;;  %v2372_v60 = vld [vmem:[#allocation5 + $0x110] ss:$8 sps:$4 sm:$0xff]   ;;  %s2929_s30 = scalar_lea.vmem %s3009_s5, %s2278_s21 }
  0x52   : > { %308 = vrot.lane.b32.xlu0 %v304_v27, %s2700_s24  ;;  %v327_v28 = vsel %vm320_vm1, %v323_v20, %v326_v23  ;;  %1276 = vmatpush1.bf16.msra.mxu1 %v2377_v39  ;;  %v2380_v62 = vld [vmem:[#allocation5 + $0x124] ss:$8 sps:$4 sm:$0xff]   ;;  %v2378_v3 = vld [vmem:[#allocation5 + $0x120] ss:$8 sps:$4 sm:$0xff]   ;;  %v2386_v5 = vld [vmem:[#allocation5 + $0x134] ss:$8 sps:$4 sm:$0xff]  }
  0x53   : > { %328 = vrot.lane.b32.xlu1 %v327_v28, %s2701_s11  ;;  %1277 = vmatprep.subr.bf16.mxu1 %v2381_v40  ;;  %v2392_v6 = vld [vmem:[#allocation5 + $0x144] ss:$8 sps:$4 sm:$0xff]   ;;  %v2390_v7 = vld [vmem:[#allocation5 + $0x140] ss:$8 sps:$4 sm:$0xff]   ;;  %v2396_v9 = vld [vmem:[#allocation5 + $0x150] ss:$8 sps:$4 sm:$0xff]  }
  0x54   : > { %v2401_v10 = vld [vmem:[#allocation5 + $0x260] ss:$8 sps:$4 sm:$0xff]   ;;  %v2404_v11 = vld [vmem:[#allocation5 + $0x164] ss:$8 sps:$4 sm:$0xff]   ;;  %v2405_v13 = vld [vmem:[#allocation5 + $0x274] ss:$8 sps:$4 sm:$0xff]  }
  0x55   : > { %v2402_v12 = vld [vmem:[#allocation5 + $0x160] ss:$8 sps:$4 sm:$0xff]   ;;  %v2407_v14 = vld [vmem:[#allocation5 + $0x270] ss:$8 sps:$4 sm:$0xff]   ;;  %v2410_v15 = vld [vmem:[#allocation5 + $0x174] ss:$8 sps:$4 sm:$0xff]  }
  0x56   : > { %316 = vrot.lane.b32.xlu0 %v315_v30, %s2702_s12  ;;  %1278 = vmatpush1.bf16.msra.mxu1 %v2383_v41  ;;  %v2408_v16 = vld [vmem:[#allocation5 + $0x170] ss:$8 sps:$4 sm:$0xff]   ;;  %v2411_v17 = vld [vmem:[#allocation5 + $0x284] ss:$8 sps:$4 sm:$0xff]   ;;  %v2413_v18 = vld [vmem:[#allocation5 + $0x280] ss:$8 sps:$4 sm:$0xff]  }
  0x57   : > { %336 = vrot.lane.b32.xlu1 %v335_v31, %s2703_s13  ;;  %1279 = vmatprep.subr.bf16.mxu1 %v2387_v42  ;;  %v2416_v19 = vld [vmem:[#allocation5 + $0x184] ss:$8 sps:$4 sm:$0xff]   ;;  %v2414_v20 = vld [vmem:[#allocation5 + $0x180] ss:$8 sps:$4 sm:$0xff]   ;;  %v2419_v22 = vld [vmem:[#allocation5 + $0x290] ss:$8 sps:$4 sm:$0xff]  }
  0x58   : > { %v2420_v24 = vld [vmem:[#allocation5 + $0x190] ss:$8 sps:$4 sm:$0xff]   ;;  %v2425_v26 = vld [vmem:[#allocation5 + $0x2a0] ss:$8 sps:$4 sm:$0xff]   ;;  %v2428_v27 = vld [vmem:[#allocation5 + $0x1a4] ss:$8 sps:$4 sm:$0xff]  }
  0x59   : > { %v2426_v28 = vld [vmem:[#allocation5 + $0x1a0] ss:$8 sps:$4 sm:$0xff]   ;;  %v2429_v29 = vld [vmem:[#allocation5 + $0x2b4] ss:$8 sps:$4 sm:$0xff]   ;;  %v2431_v30 = vld [vmem:[#allocation5 + $0x2b0] ss:$8 sps:$4 sm:$0xff]  }
  0x5a   : > { %310 = vrot.lane.b32.xlu0 %v307_v36, %s2700_s24  ;;  %1280 = vmatpush1.bf16.msra.mxu1 %v2389_v43  ;;  %v2434_v31 = vld [vmem:[#allocation5 + $0x1b4] ss:$8 sps:$4 sm:$0xff]   ;;  %v2432_v32 = vld [vmem:[#allocation5 + $0x1b0] ss:$8 sps:$4 sm:$0xff]   ;;  %v2435_v33 = vld [vmem:[#allocation5 + $0x2c4] ss:$8 sps:$4 sm:$0xff]  }
  0x5b   : > { %318 = vrot.lane.b32.xlu1 %v314_v21, %s2702_s12  ;;  %1281 = vmatprep.subr.bf16.mxu1 %v2393_v44  ;;  %v2417_v21 = vld [vmem:[#allocation5 + $0x294] ss:$8 sps:$4 sm:$0xff]   ;;  %v2437_v34 = vld [vmem:[#allocation5 + $0x2c0] ss:$8 sps:$4 sm:$0xff]   ;;  %v2440_v35 = vld [vmem:[#allocation5 + $0x1c4] ss:$8 sps:$4 sm:$0xff]  }
  0x5c   : > { %v2438_v36 = vld [vmem:[#allocation5 + $0x1c0] ss:$8 sps:$4 sm:$0xff]   ;;  %v2441_v37 = vld [vmem:[#allocation5 + $0x2d4] ss:$8 sps:$4 sm:$0xff]   ;;  %v2443_v38 = vld [vmem:[#allocation5 + $0x2d0] ss:$8 sps:$4 sm:$0xff]  }
  0x5d   : > { %v2444_v39 = vld [vmem:[#allocation5 + $0x1d0] ss:$8 sps:$4 sm:$0xff]   ;;  %v2446_v40 = vld [vmem:[#allocation5 + $0x1d4] ss:$8 sps:$4 sm:$0xff]   ;;  %v2447_v41 = vld [vmem:[#allocation5 + $0x2e4] ss:$8 sps:$4 sm:$0xff]  }
  0x5e   : > { %330 = vrot.lane.b32.xlu0 %v326_v23, %s2701_s11  ;;  %1282 = vmatpush1.bf16.msra.mxu1 %v2395_v45  ;;  %v2422_v23 = vld [vmem:[#allocation5 + $0x194] ss:$8 sps:$4 sm:$0xff]   ;;  %v2449_v42 = vld [vmem:[#allocation5 + $0x2e0] ss:$8 sps:$4 sm:$0xff]   ;;  %v2452_v43 = vld [vmem:[#allocation5 + $0x1e4] ss:$8 sps:$4 sm:$0xff]  }
  0x5f   : > { %338 = vrot.lane.b32.xlu1 %v334_v25, %s2703_s13  ;;  %1283 = vmatprep.subr.bf16.mxu1 %v2399_v46  ;;  %v2423_v25 = vld [vmem:[#allocation5 + $0x2a4] ss:$8 sps:$4 sm:$0xff]   ;;  %v2453_v44 = vld [vmem:[#allocation5 + $0x2f4] ss:$8 sps:$4 sm:$0xff]   ;;  %v2450_v45 = vld [vmem:[#allocation5 + $0x1e0] ss:$8 sps:$4 sm:$0xff]  }
  0x60   : > { %v2458_v46 = vld [vmem:[#allocation5 + $0x1f4] ss:$8 sps:$4 sm:$0xff]   ;;  %vm2704_vm3 = vmmov 1  }
  0x62   : > { %1284 = vmatpush1.bf16.msra.mxu1 %v2401_v10 }
  0x63   : > { %1285 = vmatprep.subr.bf16.mxu1 %v2405_v13 }
  0x66   : > { %1286 = vmatpush1.bf16.msra.mxu1 %v2407_v14 }
  0x67   : > { %1287 = vmatprep.subr.bf16.mxu1 %v2411_v17 }
  0x6a   : > { %1288 = vmatpush1.bf16.msra.mxu1 %v2413_v18 }
  0x6b   : > { %1289 = vmatprep.subr.bf16.mxu1 %v2417_v21 }
  0x6e   : > { %1290 = vmatpush1.bf16.msra.mxu1 %v2419_v22 }
  0x6f   : > { %1291 = vmatprep.subr.bf16.mxu1 %v2423_v25 }
  0x72   : > { %1292 = vmatpush1.bf16.msra.mxu1 %v2425_v26 }
  0x73   : > { %1293 = vmatprep.subr.bf16.mxu1 %v2429_v29 }
  0x76   : > { %1294 = vmatpush1.bf16.msra.mxu1 %v2431_v30 }
  0x77   : > { %1295 = vmatprep.subr.bf16.mxu1 %v2435_v33 }
  0x7a   : > { %1296 = vmatpush1.bf16.msra.mxu1 %v2437_v34 }
  0x7b   : > { %1297 = vmatprep.subr.bf16.mxu1 %v2441_v37 }
  0x7e   : > { %1298 = vmatpush1.bf16.msra.mxu1 %v2443_v38 }
  0x7f   : > { %1299 = vmatprep.subr.bf16.mxu1 %v2447_v41 }
  0x82   : > { %1300 = vmatpush1.bf16.msra.mxu1 %v2449_v42 }
  0x83   : > { %1301 = vmatprep.subr.bf16.mxu1 %v2453_v44 }
  0xc4   : > { %v309_v47 = vpop.permute.xlu0 %308 }
  0xc5   : > { %v329_v48 = vpop.permute.xlu1 %328  ;;  %v342_v49 = vsel %vm340_vm5, %v2839_v0, %v309_v47  ;;  %v2455_v47 = vld [vmem:[#allocation5 + $0x2f0] ss:$8 sps:$4 sm:$0xff]  }
  0xc6   : > { %1302 = vmatpush1.bf16.msra.mxu1 %v2455_v47 }
  0xc8   : > { %v317_v50 = vpop.permute.xlu0 %316 }
  0xc9   : > { %v347_v51 = vsel %vm345_vm6, %v342_v49, %v317_v50  ;;  %v337_v52 = vpop.permute.xlu1 %336  ;;  %v2462_v49 = vld [vmem:[#allocation5 + $0x304] ss:$8 sps:$4 sm:$0xff]  }
  0xca   : > { %v352_v54 = vsel %vm350_vm7, %v347_v51, %v329_v48  ;;  %v2456_v48 = vld [vmem:[#allocation5 + $0x1f0] ss:$8 sps:$4 sm:$0xff]   ;;  %1553 = vmatprep.subr.bf16.mxu1 %v2462_v49  ;;  %v2466_v50 = vld [vmem:[#allocation5 + $0x4] ss:$8 sps:$4 sm:$0xff]   ;;  %v367_v51 = vlaneseq }
  0xcb   : > { %v357_v56 = vsel %vm355_vm8, %v352_v54, %v337_v52  ;;  %v365_v54 = vld [vmem:[%s3006_s2] sm:$0x3] }
  0xcc   : > { %2101 = vmatmul.mubr.msk.bf16.vlgmr.msra.gmra.mrb[0].mxu0 %vm402_vm9, %v357_v56  ;;  %v311_v57 = vpop.permute.xlu0 %310  ;;  %v2871_v52 = vshrl.u32 %v367_v51, 7 }
  0xcd   : > { %v344_v58 = vsel %vm340_vm5, %v2841_v1, %v311_v57  ;;  %v319_v59 = vpop.permute.xlu1 %318  ;;  %456 = vmatprep.mubr.bf16.mxu0 %v2699_v8  ;;  %817 = vmatpush1.bf16.msra.mxu0 %v2366_v53  ;;  %v2384_v1 = vld [vmem:[#allocation5 + $0x130] ss:$8 sps:$4 sm:$0xff]   ;;  %v2398_v8 = vld [vmem:[#allocation5 + $0x154] ss:$8 sps:$4 sm:$0xff]   ;;  %vm541_vm5 = vmpackc.low %vm2704_vm3, %vm2704_vm3 }
  0xce   : > { %v349_v61 = vsel %vm345_vm6, %v344_v58, %v319_v59  ;;  %818 = vmatprep.subr.bf16.mxu0 %v2374_v55  ;;  %v369_v53 = vsub.s32 0, %v2871_v52  ;;  %v373_v55 = vsub.s32 1, %v2871_v52  ;;  %v519_v58 = vadd.s32 4294967294, %v2871_v52 }
  0xcf   : > { %v517_v21 = vadd.s32 16, %v2871_v52 }
  0xd0   : > { %v331_v63 = vpop.permute.xlu0 %330  ;;  %v370_v56 = vrot.slane %v365_v54, %v369_v53  ;;  %v374_v57 = vrot.slane %v365_v54, %v373_v55  ;;  %vm522_vm11 = vcmp.ge.s32.totalorder %v519_v58, 0 }
  0xd1   : > { %v354_v0 = vsel %vm350_vm7, %v349_v61, %v331_v63  ;;  %v339_v2 = vpop.permute.xlu1 %338  ;;  %819 = vmatpush1.bf16.msra.mxu0 %v2372_v60  ;;  %vm540_vm14 = vmpackc.low %vm522_vm11, %vm522_vm11  ;;  %v521_v29 = vadd.s32 4294967294, %v517_v21 }
  0xd2   : > { %v359_v4 = vsel %vm355_vm8, %v354_v0, %v339_v2  ;;  %820 = vmatprep.subr.bf16.mxu0 %v2380_v62 }
  0xd4   : > { %2102 = vmatmul.mubr.msk.bf16.gmra.mrb[4].mxu0 %vm402_vm9, %v359_v4  ;;  %vm527_vm9 = vcmp.lt.s32.totalorder %v521_v29, 16  ;;  %v2479_v29 = vld [vmem:[#allocation5 + $0x24] ss:$8 sps:$4 sm:$0xff]  }
  0xd5   : > { %821 = vmatpush1.bf16.msra.mxu0 %v2378_v3 }
  0xd6   : > { %822 = vmatprep.subr.bf16.mxu0 %v2386_v5 }
  0xd9   : > { %823 = vmatpush1.bf16.msra.mxu0 %v2384_v1 }
  0xda   : > { %824 = vmatprep.subr.bf16.mxu0 %v2392_v6 }
  0xdd   : > { %825 = vmatpush1.bf16.msra.mxu0 %v2390_v7 }
  0xde   : > { %826 = vmatprep.subr.bf16.mxu0 %v2398_v8 }
  0xe1   : > { %827 = vmatpush1.bf16.msra.mxu0 %v2396_v9 }
  0xe2   : > { %828 = vmatprep.subr.bf16.mxu0 %v2404_v11 }
  0xe5   : > { %829 = vmatpush1.bf16.msra.mxu0 %v2402_v12 }
  0xe6   : > { %830 = vmatprep.subr.bf16.mxu0 %v2410_v15 }
  0xe9   : > { %831 = vmatpush1.bf16.msra.mxu0 %v2408_v16 }
  0xea   : > { %832 = vmatprep.subr.bf16.mxu0 %v2416_v19 }
  0xed   : > { %833 = vmatpush1.bf16.msra.mxu0 %v2414_v20 }
  0xee   : > { %834 = vmatprep.subr.bf16.mxu0 %v2422_v23 }
  0xf1   : > { %835 = vmatpush1.bf16.msra.mxu0 %v2420_v24 }
  0xf2   : > { %836 = vmatprep.subr.bf16.mxu0 %v2428_v27 }
  0xf5   : > { %837 = vmatpush1.bf16.msra.mxu0 %v2426_v28 }
  0xf6   : > { %838 = vmatprep.subr.bf16.mxu0 %v2434_v31 }
  0xf9   : > { %839 = vmatpush1.bf16.msra.mxu0 %v2432_v32 }
  0xfa   : > { %840 = vmatprep.subr.bf16.mxu0 %v2440_v35 }
  0xfd   : > { %841 = vmatpush1.bf16.msra.mxu0 %v2438_v36 }
  0xfe   : > { %842 = vmatprep.subr.bf16.mxu0 %v2446_v40 }
 0x101   : > { %843 = vmatpush1.bf16.msra.mxu0 %v2444_v39 }
 0x102   : > { %844 = vmatprep.subr.bf16.mxu0 %v2452_v43 }
 0x105   : > { %845 = vmatpush1.bf16.msra.mxu0 %v2450_v45 }
 0x106   : > { %846 = vmatprep.subr.bf16.mxu0 %v2458_v46 }
 0x109   : > { %847 = vmatpush1.bf16.msra.mxu0 %v2456_v48 }
 0x10a   : > { %1021 = vmatprep.subr.bf16.mxu0 %v2466_v50 }
 0x19f   : > { %v448_v59 = vpop.f32.mrb[0].mxu0 }
 0x1a0   : > { %v449_v60 = vadd.f32 %v448_v59, %v370_v56  ;;  %v450_v61 = vpop.f32.mrb[1].mxu0 }
 0x1a1   : > { %v451_v62 = vadd.f32 %v450_v61, %v374_v57  ;;  %v452_v63 = vpop.f32.mrb[2].mxu0 }
 0x1a2   : > { %vm465_vm10 = vcmp.gt.f32.partialorder %v449_v60, 0.0  ;;  %v471_v0 = vmul.f32 0.01, %v449_v60  ;;  %v453_v2 = vadd.f32 %v452_v63, %v370_v56  ;;  %v454_v3 = vpop.f32.mrb[3].mxu0  ;;  %v2460_v63 = vld [vmem:[#allocation5 + $0x300] ss:$8 sps:$4 sm:$0xff]  }
 0x1a3   : > { %vm466_vm12 = vcmp.gt.f32.partialorder %v451_v62, 0.0  ;;  %v472_v4 = vmul.f32 0.01, %v451_v62  ;;  %v455_v5 = vadd.f32 %v454_v3, %v374_v57 }
 0x1a4   : > { %v477_v1 = vsel %vm465_vm10, %v449_v60, %v471_v0  ;;  %vm467_vm13 = vcmp.gt.f32.partialorder %v453_v2, 0.0  ;;  %v473_v6 = vmul.f32 0.01, %v453_v2  ;;  %vm542_vm10 = vmpackc.low %vm527_vm9, %vm527_vm9 }
 0x1a5   : > { %v478_v7 = vsel %vm466_vm12, %v451_v62, %v472_v4  ;;  %vm468_vm15 = vcmp.gt.f32.partialorder %v455_v5, 0.0  ;;  %v474_v8 = vmul.f32 0.01, %v455_v5 }
 0x1a6   : > { %v2279_v9 = vpack.c.bf16 %v478_v7, %v477_v1  ;;  %v479_v10 = vsel %vm467_vm13, %v453_v2, %v473_v6 }
 0x1a7   : > { %v480_v11 = vsel %vm468_vm15, %v455_v5, %v474_v8  ;;  %v458_v12 = vpop.f32.mrb[4].mxu0  ;;  %v2469_v8 = vld [vmem:[#allocation5 + $0x314] ss:$8 sps:$4 sm:$0xff]  }
 0x1a8   : > { %v543_v13 = vsel %vm540_vm14, %v2279_v9, 0  ;;  %v2280_v14 = vpack.c.bf16 %v480_v11, %v479_v10  ;;  %v459_v15 = vadd.f32 %v458_v12, %v370_v56  ;;  %v460_v16 = vpop.f32.mrb[5].mxu0  ;;  %v2464_v9 = vld [vmem:[#allocation5] ss:$8 sps:$4 sm:$0xff]  }
 0x1a9   : > { %546 = vst [vmem:[#allocation2] sm:$0xff] %v543_v13  ;;  %v461_v17 = vadd.f32 %v460_v16, %v374_v57  ;;  %v462_v18 = vpop.f32.mrb[6].mxu0  ;;  %v2473_v16 = vld [vmem:[#allocation5 + $0x14] ss:$8 sps:$4 sm:$0xff]  }
 0x1aa   : > { %v544_v19 = vsel %vm541_vm5, %v2280_v14, 0  ;;  %vm469_vm7 = vcmp.gt.f32.partialorder %v459_v15, 0.0  ;;  %v475_v20 = vmul.f32 0.01, %v459_v15  ;;  %v463_v22 = vpop.f32.mrb[7].mxu0 }
 0x1ab   : > { %vm470_vm8 = vcmp.gt.f32.partialorder %v461_v17, 0.0  ;;  %v476_v23 = vmul.f32 0.01, %v461_v17  ;;  %v2884_v24 = vcombine.low %v543_v13, %v544_v19  ;;  %v2886_v25 = vcombine.high %v543_v13, %v544_v19  ;;  %v2476_v22 = vld [vmem:[#allocation5 + $0x324] ss:$8 sps:$4 sm:$0xff]  }
 0x1ac   : > { %v481_v26 = vsel %vm469_vm7, %v459_v15, %v475_v20 }
 0x1ad   : > { %v482_v27 = vsel %vm470_vm8, %v461_v17, %v476_v23  ;;  %v645_v32 = vshll.u32 %v2886_v25, 16  ;;  %v633_v34 = vshll.u32 %v2884_v24, 16  ;;  %v643_v40 = vshrl.u32 %v2886_v25, 16 }
 0x1ae   : > { %v2281_v28 = vpack.c.bf16 %v482_v27, %v481_v26  ;;  %v631_v41 = vshrl.u32 %v2884_v24, 16 }
 0x1af   : > { %v647_v36 = vrot.slane %v645_v32, 1  ;;  %v635_v37 = vrot.slane %v633_v34, 1  ;;  %v2477_v32 = vld [vmem:[#allocation5 + $0x20] ss:$8 sps:$4 sm:$0xff]   ;;  %v2480_v34 = vld [vmem:[#allocation5 + $0x330] ss:$8 sps:$4 sm:$0xff]  }
 0x1b0   : > { %505 = vst [vmem:[#allocation2 + $0x10] sm:$0x33] %v2281_v28  ;;  %v1064_v33 = vld [vmem:[#allocation2] sm:$0xee]  ;;  %v2471_v28 = vld [vmem:[#allocation5 + $0x10] ss:$8 sps:$4 sm:$0xff]  }
 0x1b1   : > { %v2175_v35 = vcombine.high %v1064_v33, %v544_v19  ;;  %v1600_v38 = vld [vmem:[#allocation2] sm:$0xcc]  ;;  %v2890_v39 = vcombine.low %v1064_v33, %v544_v19  ;;  %v648_v43 = vor.u32 %v647_v36, %v643_v40  ;;  %v636_v50 = vor.u32 %v635_v37, %v631_v41  ;;  %v2485_v33 = vld [vmem:[#allocation5 + $0x34] ss:$8 sps:$4 sm:$0xff]  }
 0x1b2   : > { %v2243_v47 = vcombine.high %v1600_v38, %v544_v19  ;;  %v2242_v58 = vcombine.low %v1600_v38, %v544_v19  ;;  %v2467_v19 = vld [vmem:[#allocation5 + $0x310] ss:$8 sps:$4 sm:$0xff]   ;;  %v2491_v36 = vld [vmem:[#allocation5 + $0x44] ss:$8 sps:$4 sm:$0xff]   ;;  %v2486_v37 = vld [vmem:[#allocation5 + $0x340] ss:$8 sps:$4 sm:$0xff]  }
 0x1b3   : > { %v1375_v45 = vshrl.u32 %v2175_v35, 16  ;;  %v1378_v46 = vshll.u32 %v2175_v35, 16  ;;  %v1106_v54 = vrot.slane %v2175_v35, 1  ;;  %v1103_v56 = vrot.slane %v2890_v39, 1  ;;  %v2488_v35 = vld [vmem:[#allocation5 + $0x344] ss:$8 sps:$4 sm:$0xff]  }
 0x1b4   : > { %v1642_v12 = vrot.slane %v2243_v47, 2  ;;  %v1639_v13 = vrot.slane %v2242_v58, 2  ;;  %v2494_v38 = vld [vmem:[#allocation5 + $0x354] ss:$8 sps:$4 sm:$0xff]   ;;  %v2489_v40 = vld [vmem:[#allocation5 + $0x40] ss:$8 sps:$4 sm:$0xff]  }
 0x1b5   : > { %v1377_v0 = vrot.slane %v1375_v45, 1  ;;  %v1380_v2 = vrot.slane %v1378_v46, 2  ;;  %v2497_v41 = vld [vmem:[#allocation5 + $0x54] ss:$8 sps:$4 sm:$0xff]   ;;  %v2503_v45 = vld [vmem:[#allocation5 + $0x64] ss:$8 sps:$4 sm:$0xff]  }
 0x1b6   : > { %v2498_v46 = vld [vmem:[#allocation5 + $0x360] ss:$8 sps:$4 sm:$0xff]   ;;  %v2506_v47 = vld [vmem:[#allocation5 + $0x374] ss:$8 sps:$4 sm:$0xff]  }
 0x1b7   : > { %v533_v30 = vld [vmem:[#allocation2 + $0x10] sm:$0x33]  ;;  %v1381_v20 = vor.u32 %v1380_v2, %v1377_v0  ;;  %v2510_v58 = vld [vmem:[#allocation5 + $0x380] ss:$8 sps:$4 sm:$0xff]   ;;  %v2527_v2 = vld [vmem:[#allocation5 + $0xa4] ss:$8 sps:$4 sm:$0xff]  }
 0x1b8   : > { %v545_v31 = vsel %vm542_vm10, %v533_v30, 0  ;;  %v2474_v30 = vld [vmem:[#allocation5 + $0x320] ss:$8 sps:$4 sm:$0xff]   ;;  %v2519_v0 = vld [vmem:[#allocation5 + $0x90] ss:$8 sps:$4 sm:$0xff]  }
 0x1b9   : > { %548 = vst [vmem:[#allocation2 + $0x10] sm:$0x33] %v545_v31  ;;  %v2482_v31 = vld [vmem:[#allocation5 + $0x334] ss:$8 sps:$4 sm:$0xff]  }
 0x1c0   : > { %v583_v42 = vld [vmem:[#allocation2 + $0x10] sm:$0x11] }
 0x1c1   : > { %v1318_v44 = vld [vmem:[#allocation2 + $0x10] sm:$0x33]  ;;  %v2109_v48 = vcombine.high %v583_v42, %v583_v42  ;;  %v2108_v49 = vcombine.low %v583_v42, %v583_v42 }
 0x1c2   : > { %v2209_v51 = vcombine.high %v1318_v44, %v1318_v44  ;;  %v2895_v57 = vcombine.low %v1318_v44, %v1318_v44  ;;  %v2492_v42 = vld [vmem:[#allocation5 + $0x350] ss:$8 sps:$4 sm:$0xff]  }
 0x1c3   : > { %v1107_v59 = vrot.slane %v2109_v48, 1  ;;  %v638_v60 = vshll.u32 %v2108_v49, 16  ;;  %v1104_v61 = vrot.slane %v2108_v49, 1  ;;  %v650_v62 = vshll.u32 %v2109_v48, 16  ;;  %v2495_v44 = vld [vmem:[#allocation5 + $0x50] ss:$8 sps:$4 sm:$0xff]  }
 0x1c4   : > { %v1383_v3 = vshrl.u32 %v2209_v51, 16  ;;  %v1386_v4 = vshll.u32 %v2209_v51, 16  ;;  %v1643_v17 = vrot.slane %v2209_v51, 2  ;;  %v1640_v18 = vrot.slane %v2895_v57, 2  ;;  %v2501_v48 = vld [vmem:[#allocation5 + $0x60] ss:$8 sps:$4 sm:$0xff]  }
 0x1c5   : > { %v1108_v5 = vsel %vm312_vm2, %v1106_v54, %v1107_v59  ;;  %v1105_v1 = vsel %vm312_vm2, %v1103_v56, %v1104_v61  ;;  %v652_v6 = vrot.slane %v650_v62, 1  ;;  %v640_v7 = vrot.slane %v638_v60, 1  ;;  %v2509_v49 = vld [vmem:[#allocation5 + $0x74] ss:$8 sps:$4 sm:$0xff]   ;;  %v2512_v51 = vld [vmem:[#allocation5 + $0x384] ss:$8 sps:$4 sm:$0xff]  }
 0x1c6   : > { %1303 = vmatprep.mubr.bf16.mxu1 %v1108_v5  ;;  %v1385_v10 = vrot.slane %v1383_v3, 1  ;;  %v1388_v11 = vrot.slane %v1386_v4, 2  ;;  %v2903_v23 = vsel %vm332_vm4, %v1642_v12, %v1643_v17  ;;  %v2906_v26 = vsel %vm332_vm4, %v1639_v13, %v1640_v18  ;;  %v2507_v54 = vld [vmem:[#allocation5 + $0x70] ss:$8 sps:$4 sm:$0xff]   ;;  %v2515_v56 = vld [vmem:[#allocation5 + $0x84] ss:$8 sps:$4 sm:$0xff]  }
 0x1c7   : > { %1304 = vmatmul.mubr.bf16.vlgmr.msra.gmra.mrb[0].mxu1 %v1105_v1  ;;  %v653_v14 = vsel %vm292_vm0, %v648_v43, %v652_v6  ;;  %v641_v15 = vsel %vm292_vm0, %v636_v50, %v640_v7  ;;  %v2500_v43 = vld [vmem:[#allocation5 + $0x364] ss:$8 sps:$4 sm:$0xff]   ;;  %v2504_v50 = vld [vmem:[#allocation5 + $0x370] ss:$8 sps:$4 sm:$0xff]   ;;  %v2518_v59 = vld [vmem:[#allocation5 + $0x394] ss:$8 sps:$4 sm:$0xff]  }
 0x1c8   : > { %1554 = vmatpush1.bf16.msra.mxu1 %v2460_v63  ;;  %848 = vmatprep.mubr.bf16.mxu0 %v653_v14  ;;  %v1389_v21 = vor.u32 %v1388_v11, %v1385_v10  ;;  %v2513_v60 = vld [vmem:[#allocation5 + $0x80] ss:$8 sps:$4 sm:$0xff]   ;;  %v2521_v61 = vld [vmem:[#allocation5 + $0x94] ss:$8 sps:$4 sm:$0xff]   ;;  %v2516_v62 = vld [vmem:[#allocation5 + $0x390] ss:$8 sps:$4 sm:$0xff]  }
 0x1c9   : > { %849 = vmatmul.mubr.bf16.vlgmr.msra.gmra.mrb[8].mxu0 %v641_v15  ;;  %1555 = vmatprep.subr.bf16.mxu1 %v2469_v8  ;;  %v2524_v63 = vld [vmem:[#allocation5 + $0x3a4] ss:$8 sps:$4 sm:$0xff]   ;;  %v2522_v3 = vld [vmem:[#allocation5 + $0x3a0] ss:$8 sps:$4 sm:$0xff]   ;;  %v2530_v4 = vld [vmem:[#allocation5 + $0x3b4] ss:$8 sps:$4 sm:$0xff]  }
 0x1ca   : > { %1022 = vmatpush1.bf16.msra.mxu0 %v2464_v9  ;;  %1053 = vmatprep.mubr.bf16.mxu0 %v2886_v25  ;;  %v1390_v27 = vsel %vm320_vm1, %v1381_v20, %v1389_v21  ;;  %v2483_v25 = vld [vmem:[#allocation5 + $0x30] ss:$8 sps:$4 sm:$0xff]   ;;  %v2525_v5 = vld [vmem:[#allocation5 + $0xa0] ss:$8 sps:$4 sm:$0xff]   ;;  %v2533_v1 = vld [vmem:[#allocation5 + $0xb4] ss:$8 sps:$4 sm:$0xff]  }
 0x1cb   : > { %1585 = vmatprep.mubr.bf16.mxu1 %v1390_v27  ;;  %1023 = vmatprep.subr.bf16.mxu0 %v2473_v16  ;;  %v2528_v6 = vld [vmem:[#allocation5 + $0x3b0] ss:$8 sps:$4 sm:$0xff]   ;;  %v2536_v7 = vld [vmem:[#allocation5 + $0x3c4] ss:$8 sps:$4 sm:$0xff]   ;;  %v2534_v10 = vld [vmem:[#allocation5 + $0x3c0] ss:$8 sps:$4 sm:$0xff]  }
 0x1cc   : > { %1556 = vmatpush1.bf16.msra.mxu1 %v2467_v19  ;;  %v2531_v8 = vld [vmem:[#allocation5 + $0xb0] ss:$8 sps:$4 sm:$0xff]   ;;  %v2539_v9 = vld [vmem:[#allocation5 + $0xc4] ss:$8 sps:$4 sm:$0xff]   ;;  %v2542_v11 = vld [vmem:[#allocation5 + $0x3d4] ss:$8 sps:$4 sm:$0xff]  }
 0x1cd   : > { %1557 = vmatprep.subr.bf16.mxu1 %v2476_v22  ;;  %v2537_v12 = vld [vmem:[#allocation5 + $0xc0] ss:$8 sps:$4 sm:$0xff]   ;;  %v2545_v13 = vld [vmem:[#allocation5 + $0xd4] ss:$8 sps:$4 sm:$0xff]   ;;  %v2540_v14 = vld [vmem:[#allocation5 + $0x3d0] ss:$8 sps:$4 sm:$0xff]  }
 0x1ce   : > { %1024 = vmatpush1.bf16.msra.mxu0 %v2471_v28  ;;  %v2548_v15 = vld [vmem:[#allocation5 + $0x3e4] ss:$8 sps:$4 sm:$0xff]   ;;  %v2543_v16 = vld [vmem:[#allocation5 + $0xd0] ss:$8 sps:$4 sm:$0xff]   ;;  %v1366_v17 = vshrl.u32 %v2895_v57, 16  ;;  %v1369_v18 = vshll.u32 %v2895_v57, 16 }
 0x1cf   : > { %1025 = vmatprep.subr.bf16.mxu0 %v2479_v29  ;;  %v2551_v19 = vld [vmem:[#allocation5 + $0xe4] ss:$8 sps:$4 sm:$0xff]   ;;  %v2546_v20 = vld [vmem:[#allocation5 + $0x3e0] ss:$8 sps:$4 sm:$0xff]   ;;  %v1358_v21 = vshrl.u32 %v2890_v39, 16  ;;  %v1361_v22 = vshll.u32 %v2890_v39, 16 }
 0x1d0   : > { %1558 = vmatpush1.bf16.msra.mxu1 %v2474_v30  ;;  %v2554_v27 = vld [vmem:[#allocation5 + $0x3f4] ss:$8 sps:$4 sm:$0xff]   ;;  %v2549_v28 = vld [vmem:[#allocation5 + $0xe0] ss:$8 sps:$4 sm:$0xff]   ;;  %v1368_v29 = vrot.slane %v1366_v17, 1  ;;  %v1371_v30 = vrot.slane %v1369_v18, 2 }
 0x1d1   : > { %1559 = vmatprep.subr.bf16.mxu1 %v2482_v31  ;;  %v2557_v31 = vld [vmem:[#allocation5 + $0xf4] ss:$8 sps:$4 sm:$0xff]   ;;  %v1363_v57 = vrot.slane %v1361_v22, 2 }
 0x1d2   : > { %1026 = vmatpush1.bf16.msra.mxu0 %v2477_v32  ;;  %v2552_v32 = vld [vmem:[#allocation5 + $0x3f0] ss:$8 sps:$4 sm:$0xff]  }
 0x1d3   : > { %1027 = vmatprep.subr.bf16.mxu0 %v2485_v33  ;;  %v1360_v33 = vrot.slane %v1358_v21, 1 }
 0x1d4   : > { %1560 = vmatpush1.bf16.msra.mxu1 %v2480_v34  ;;  %v2561_v34 = vld [vmem:[#allocation5 + $0x404] ss:$8 sps:$4 sm:$0xff]  }
 0x1d5   : > { %1561 = vmatprep.subr.bf16.mxu1 %v2488_v35  ;;  %v2555_v35 = vld [vmem:[#allocation5 + $0xf0] ss:$8 sps:$4 sm:$0xff]   ;;  %v1364_v39 = vor.u32 %v1363_v57, %v1360_v33 }
 0x1d6   : > { %1028 = vmatpush1.bf16.msra.mxu0 %v2483_v25  ;;  %v1372_v25 = vor.u32 %v1371_v30, %v1368_v29 }
 0x1d7   : > { %1029 = vmatprep.subr.bf16.mxu0 %v2491_v36  ;;  %v2559_v36 = vld [vmem:[#allocation5 + $0x400] ss:$8 sps:$4 sm:$0xff]  }
 0x1d8   : > { %1562 = vmatpush1.bf16.msra.mxu1 %v2486_v37  ;;  %v2564_v37 = vld [vmem:[#allocation5 + $0x414] ss:$8 sps:$4 sm:$0xff]  }
 0x1d9   : > { %1563 = vmatprep.subr.bf16.mxu1 %v2494_v38  ;;  %v1373_v38 = vsel %vm320_vm1, %v1364_v39, %v1372_v25 }
 0x1da   : > { %1030 = vmatpush1.bf16.msra.mxu0 %v2489_v40  ;;  %v2562_v40 = vld [vmem:[#allocation5 + $0x410] ss:$8 sps:$4 sm:$0xff]  }
 0x1db   : > { %1031 = vmatprep.subr.bf16.mxu0 %v2497_v41  ;;  %v2567_v41 = vld [vmem:[#allocation5 + $0x424] ss:$8 sps:$4 sm:$0xff]  }
 0x1dc   : > { %1564 = vmatpush1.bf16.msra.mxu1 %v2492_v42  ;;  %v2565_v42 = vld [vmem:[#allocation5 + $0x420] ss:$8 sps:$4 sm:$0xff]  }
 0x1dd   : > { %1565 = vmatprep.subr.bf16.mxu1 %v2500_v43  ;;  %v2570_v43 = vld [vmem:[#allocation5 + $0x434] ss:$8 sps:$4 sm:$0xff]  }
 0x1de   : > { %1032 = vmatpush1.bf16.msra.mxu0 %v2495_v44  ;;  %v2568_v44 = vld [vmem:[#allocation5 + $0x430] ss:$8 sps:$4 sm:$0xff]  }
 0x1df   : > { %1033 = vmatprep.subr.bf16.mxu0 %v2503_v45  ;;  %v2573_v45 = vld [vmem:[#allocation5 + $0x444] ss:$8 sps:$4 sm:$0xff]  }
 0x1e0   : > { %1566 = vmatpush1.bf16.msra.mxu1 %v2498_v46  ;;  %v2571_v46 = vld [vmem:[#allocation5 + $0x440] ss:$8 sps:$4 sm:$0xff]  }
 0x1e1   : > { %1567 = vmatprep.subr.bf16.mxu1 %v2506_v47  ;;  %v2576_v47 = vld [vmem:[#allocation5 + $0x454] ss:$8 sps:$4 sm:$0xff]  }
 0x1e2   : > { %1034 = vmatpush1.bf16.msra.mxu0 %v2501_v48  ;;  %v2574_v48 = vld [vmem:[#allocation5 + $0x450] ss:$8 sps:$4 sm:$0xff]  }
 0x1e3   : > { %1035 = vmatprep.subr.bf16.mxu0 %v2509_v49  ;;  %v2582_v49 = vld [vmem:[#allocation5 + $0x474] ss:$8 sps:$4 sm:$0xff]  }
 0x1e4   : > { %1568 = vmatpush1.bf16.msra.mxu1 %v2504_v50  ;;  %v2580_v50 = vld [vmem:[#allocation5 + $0x470] ss:$8 sps:$4 sm:$0xff]  }
 0x1e5   : > { %1569 = vmatprep.subr.bf16.mxu1 %v2512_v51  ;;  %v2585_v51 = vld [vmem:[#allocation5 + $0x484] ss:$8 sps:$4 sm:$0xff]  }
 0x1e6   : > { %1036 = vmatpush1.bf16.msra.mxu0 %v2507_v54  ;;  %v2583_v54 = vld [vmem:[#allocation5 + $0x480] ss:$8 sps:$4 sm:$0xff]  }
 0x1e7   : > { %1037 = vmatprep.subr.bf16.mxu0 %v2515_v56  ;;  %v2588_v56 = vld [vmem:[#allocation5 + $0x494] ss:$8 sps:$4 sm:$0xff]  }
 0x1e8   : > { %1570 = vmatpush1.bf16.msra.mxu1 %v2510_v58  ;;  %v2586_v58 = vld [vmem:[#allocation5 + $0x490] ss:$8 sps:$4 sm:$0xff]  }
 0x1e9   : > { %1571 = vmatprep.subr.bf16.mxu1 %v2518_v59  ;;  %v2591_v59 = vld [vmem:[#allocation5 + $0x4a4] ss:$8 sps:$4 sm:$0xff]  }
 0x1ea   : > { %1038 = vmatpush1.bf16.msra.mxu0 %v2513_v60  ;;  %v2589_v60 = vld [vmem:[#allocation5 + $0x4a0] ss:$8 sps:$4 sm:$0xff]  }
 0x1eb   : > { %1039 = vmatprep.subr.bf16.mxu0 %v2521_v61  ;;  %v2594_v61 = vld [vmem:[#allocation5 + $0x4b4] ss:$8 sps:$4 sm:$0xff]  }
 0x1ec   : > { %1572 = vmatpush1.bf16.msra.mxu1 %v2516_v62  ;;  %v2592_v62 = vld [vmem:[#allocation5 + $0x4b0] ss:$8 sps:$4 sm:$0xff]  }
 0x1ed   : > { %1573 = vmatprep.subr.bf16.mxu1 %v2524_v63  ;;  %v2597_v63 = vld [vmem:[#allocation5 + $0x4c4] ss:$8 sps:$4 sm:$0xff]  }
 0x1ee   : > { %1040 = vmatpush1.bf16.msra.mxu0 %v2519_v0  ;;  %v2595_v0 = vld [vmem:[#allocation5 + $0x4c0] ss:$8 sps:$4 sm:$0xff]  }
 0x1ef   : > { %1041 = vmatprep.subr.bf16.mxu0 %v2527_v2  ;;  %v2600_v2 = vld [vmem:[#allocation5 + $0x4d4] ss:$8 sps:$4 sm:$0xff]  }
 0x1f0   : > { %1574 = vmatpush1.bf16.msra.mxu1 %v2522_v3  ;;  %v2598_v3 = vld [vmem:[#allocation5 + $0x4d0] ss:$8 sps:$4 sm:$0xff]  }
 0x1f1   : > { %1575 = vmatprep.subr.bf16.mxu1 %v2530_v4  ;;  %v2603_v4 = vld [vmem:[#allocation5 + $0x4e4] ss:$8 sps:$4 sm:$0xff]  }
 0x1f2   : > { %1042 = vmatpush1.bf16.msra.mxu0 %v2525_v5  ;;  %v2601_v5 = vld [vmem:[#allocation5 + $0x4e0] ss:$8 sps:$4 sm:$0xff]  }
 0x1f3   : > { %1043 = vmatprep.subr.bf16.mxu0 %v2533_v1  ;;  %v2606_v1 = vld [vmem:[#allocation5 + $0x4f4] ss:$8 sps:$4 sm:$0xff]  }
 0x1f4   : > { %1576 = vmatpush1.bf16.msra.mxu1 %v2528_v6  ;;  %v2604_v6 = vld [vmem:[#allocation5 + $0x4f0] ss:$8 sps:$4 sm:$0xff]  }
 0x1f5   : > { %1577 = vmatprep.subr.bf16.mxu1 %v2536_v7 }
 0x1f6   : > { %1044 = vmatpush1.bf16.msra.mxu0 %v2531_v8 }
 0x1f7   : > { %1045 = vmatprep.subr.bf16.mxu0 %v2539_v9 }
 0x1f8   : > { %1578 = vmatpush1.bf16.msra.mxu1 %v2534_v10 }
 0x1f9   : > { %1579 = vmatprep.subr.bf16.mxu1 %v2542_v11  ;;  %v1854_v11 = vld [vmem:[%s3008_s4] sm:$0x3] }
 0x1fa   : > { %1046 = vmatpush1.bf16.msra.mxu0 %v2537_v12  ;;  %v1859_v12 = vrot.slane %v1854_v11, %v369_v53 }
 0x1fb   : > { %1047 = vmatprep.subr.bf16.mxu0 %v2545_v13 }
 0x1fc   : > { %1580 = vmatpush1.bf16.msra.mxu1 %v2540_v14  ;;  %v1863_v14 = vrot.slane %v1854_v11, %v373_v55 }
 0x1fd   : > { %1581 = vmatprep.subr.bf16.mxu1 %v2548_v15 }
 0x1fe   : > { %1048 = vmatpush1.bf16.msra.mxu0 %v2543_v16 }
 0x1ff   : > { %1049 = vmatprep.subr.bf16.mxu0 %v2551_v19 }
 0x200   : > { %1582 = vmatpush1.bf16.msra.mxu1 %v2546_v20 }
 0x201   : > { %1583 = vmatprep.subr.bf16.mxu1 %v2554_v27 }
 0x202   : > { %1050 = vmatpush1.bf16.msra.mxu0 %v2549_v28 }
 0x203   : > { %1051 = vmatprep.subr.bf16.mxu0 %v2557_v31 }
 0x204   : > { %1584 = vmatpush1.bf16.msra.mxu1 %v2552_v32 }
 0x205   : > { %1807 = vmatprep.subr.bf16.mxu1 %v2561_v34 }
 0x206   : > { %1052 = vmatpush1.bf16.msra.mxu0 %v2555_v35 }
 0x207   : > { %1586 = vmatmul.mubr.bf16.vlgmr.msra.gmra.mrb[0].mxu1 %v1373_v38 }
 0x208   : > { %1808 = vmatpush1.bf16.msra.mxu1 %v2559_v36  ;;  %1839 = vmatprep.mubr.bf16.mxu1 %v2903_v23  ;;  %v2579_v23 = vld [vmem:[#allocation5 + $0x464] ss:$8 sps:$4 sm:$0xff]  }
 0x209   : > { %1054 = vmatmul.mubr.bf16.vlgmr.msra.gmra.mrb[8].mxu0 %v2884_v24  ;;  %1809 = vmatprep.subr.bf16.mxu1 %v2564_v37  ;;  %v2577_v24 = vld [vmem:[#allocation5 + $0x460] ss:$8 sps:$4 sm:$0xff]  }
 0x20c   : > { %1810 = vmatpush1.bf16.msra.mxu1 %v2562_v40 }
 0x20d   : > { %1811 = vmatprep.subr.bf16.mxu1 %v2567_v41 }
 0x210   : > { %1812 = vmatpush1.bf16.msra.mxu1 %v2565_v42 }
 0x211   : > { %1813 = vmatprep.subr.bf16.mxu1 %v2570_v43 }
 0x214   : > { %1814 = vmatpush1.bf16.msra.mxu1 %v2568_v44 }
 0x215   : > { %1815 = vmatprep.subr.bf16.mxu1 %v2573_v45 }
 0x218   : > { %1816 = vmatpush1.bf16.msra.mxu1 %v2571_v46 }
 0x219   : > { %1817 = vmatprep.subr.bf16.mxu1 %v2576_v47 }
 0x21c   : > { %1818 = vmatpush1.bf16.msra.mxu1 %v2574_v48 }
 0x21d   : > { %1819 = vmatprep.subr.bf16.mxu1 %v2579_v23 }
 0x220   : > { %1820 = vmatpush1.bf16.msra.mxu1 %v2577_v24 }
 0x221   : > { %1821 = vmatprep.subr.bf16.mxu1 %v2582_v49 }
 0x224   : > { %1822 = vmatpush1.bf16.msra.mxu1 %v2580_v50 }
 0x225   : > { %1823 = vmatprep.subr.bf16.mxu1 %v2585_v51 }
 0x228   : > { %1824 = vmatpush1.bf16.msra.mxu1 %v2583_v54 }
 0x229   : > { %1825 = vmatprep.subr.bf16.mxu1 %v2588_v56 }
 0x22c   : > { %1826 = vmatpush1.bf16.msra.mxu1 %v2586_v58 }
 0x22d   : > { %1827 = vmatprep.subr.bf16.mxu1 %v2591_v59 }
 0x230   : > { %1828 = vmatpush1.bf16.msra.mxu1 %v2589_v60 }
 0x231   : > { %1829 = vmatprep.subr.bf16.mxu1 %v2594_v61 }
 0x234   : > { %1830 = vmatpush1.bf16.msra.mxu1 %v2592_v62 }
 0x235   : > { %1831 = vmatprep.subr.bf16.mxu1 %v2597_v63 }
 0x238   : > { %1832 = vmatpush1.bf16.msra.mxu1 %v2595_v0 }
 0x239   : > { %1833 = vmatprep.subr.bf16.mxu1 %v2600_v2 }
 0x23c   : > { %1834 = vmatpush1.bf16.msra.mxu1 %v2598_v3 }
 0x23d   : > { %1835 = vmatprep.subr.bf16.mxu1 %v2603_v4 }
 0x240   : > { %1836 = vmatpush1.bf16.msra.mxu1 %v2601_v5 }
 0x241   : > { %1837 = vmatprep.subr.bf16.mxu1 %v2606_v1 }
 0x244   : > { %1838 = vmatpush1.bf16.msra.mxu1 %v2604_v6 }
 0x247   : > { %1840 = vmatmul.mubr.bf16.vlgmr.msra.gmra.mrb[0].mxu1 %v2906_v26 }
 0x2dc   : > { %v1055_v7 = vpop.f32.mrb[8].mxu0 }
 0x2dd   : > { %v1057_v8 = vpop.f32.mrb[9].mxu0 }
 0x2de   : > { %v1059_v9 = vpop.f32.mrb[10].mxu0 }
 0x2df   : > { %v1061_v10 = vpop.f32.mrb[11].mxu0 }
 0x31a   : > { %v1841_v13 = vpop.f32.mrb[0].mxu1 }
 0x31b   : > { %v2282_v15 = vadd.f32 %v1841_v13, %v1055_v7  ;;  %v1843_v16 = vpop.f32.mrb[1].mxu1 }
 0x31c   : > { %v2283_v17 = vadd.f32 %v1843_v16, %v1057_v8  ;;  %v1845_v18 = vpop.f32.mrb[2].mxu1 }
 0x31d   : > { %v1866_v26 = vadd.f32 %v2282_v15, %v1859_v12  ;;  %v2284_v19 = vadd.f32 %v1845_v18, %v1059_v9  ;;  %v1847_v20 = vpop.f32.mrb[3].mxu1 }
 0x31e   : > { %v1867_v21 = vadd.f32 %v2283_v17, %v1863_v14  ;;  %v2285_v22 = vadd.f32 %v1847_v20, %v1061_v10 }
 0x31f   : > { %v1868_v27 = vadd.f32 %v2284_v19, %v1859_v12  ;;  %vm1870_vm0 = vcmp.gt.f32.partialorder %v1866_v26, 0.0  ;;  %v1874_v28 = vmul.f32 0.01, %v1866_v26 }
 0x320   : > { %v1869_v29 = vadd.f32 %v2285_v22, %v1863_v14  ;;  %vm1871_vm1 = vcmp.gt.f32.partialorder %v1867_v21, 0.0  ;;  %v1875_v53 = vmul.f32 0.01, %v1867_v21 }
 0x321   : > { %v1878_v30 = vsel %vm1870_vm0, %v1866_v26, %v1874_v28  ;;  %v1876_v31 = vmul.f32 0.01, %v1868_v27  ;;  %vm1872_vm2 = vcmp.gt.f32.partialorder %v1868_v27, 0.0 }
 0x322   : > { %1882 = vxpose.xlu0.b32.start [1/2] (short) %v1878_v30, 128  ;;  %v1879_v52 = vsel %vm1871_vm1, %v1867_v21, %v1875_v53  ;;  %v1877_v55 = vmul.f32 0.01, %v1869_v29  ;;  %vm1873_vm4 = vcmp.gt.f32.partialorder %v1869_v29, 0.0 }
 0x323   : > { %1914 = vxpose.xlu1.b32.start [1/2] (short) %v1879_v52, 128  ;;  %v1880_v32 = vsel %vm1872_vm2, %v1868_v27, %v1876_v31 }
 0x324   : > { %v1881_v33 = vsel %vm1873_vm4, %v1869_v29, %v1877_v55 }
 0x326   : > { %1883 = vxpose.xlu0.b32.end [2/2] (short) %v1880_v32, 128 }
 0x327   : > { %1915 = vxpose.xlu1.b32.end [2/2] (short) %v1881_v33, 128 }
 0x3a2   : > { %v1898_v57 = vpop.trf.xlu0 }
 0x3a3   : > { %1946 = vst.msk [vmem:[%s2929_s30] sm:$0xff] %vm345_vm6, %v1898_v57  ;;  %v1930_v34 = vpop.trf.xlu1 }
 0x3a4   : > { %1962 = vst.msk [vmem:[%s2929_s30 + $0x80] sm:$0xff] %vm345_vm6, %v1930_v34 }
 0x3a6   : > { %v1899_v35 = vpop.trf.xlu0 }
 0x3a7   : > { %1947 = vst.msk [vmem:[%s2929_s30 + $0x8] sm:$0xff] %vm345_vm6, %v1899_v35  ;;  %v1931_v25 = vpop.trf.xlu1 }
 0x3a8   : > { %1963 = vst.msk [vmem:[%s2929_s30 + $0x88] sm:$0xff] %vm345_vm6, %v1931_v25 }
 0x3aa   : > { %v1900_v39 = vpop.trf.xlu0 }
 0x3ab   : > { %1948 = vst.msk [vmem:[%s2929_s30 + $0x10] sm:$0xff] %vm345_vm6, %v1900_v39  ;;  %v1932_v36 = vpop.trf.xlu1 }
 0x3ac   : > { %1964 = vst.msk [vmem:[%s2929_s30 + $0x90] sm:$0xff] %vm345_vm6, %v1932_v36 }
 0x3ae   : > { %v1901_v37 = vpop.trf.xlu0 }
 0x3af   : > { %1949 = vst.msk [vmem:[%s2929_s30 + $0x18] sm:$0xff] %vm345_vm6, %v1901_v37  ;;  %v1933_v38 = vpop.trf.xlu1 }
 0x3b0   : > { %1965 = vst.msk [vmem:[%s2929_s30 + $0x98] sm:$0xff] %vm345_vm6, %v1933_v38 }
 0x3b2   : > { %v1902_v40 = vpop.trf.xlu0 }
 0x3b3   : > { %1950 = vst.msk [vmem:[%s2929_s30 + $0x20] sm:$0xff] %vm345_vm6, %v1902_v40  ;;  %v1934_v41 = vpop.trf.xlu1 }
 0x3b4   : > { %1966 = vst.msk [vmem:[%s2929_s30 + $0xa0] sm:$0xff] %vm345_vm6, %v1934_v41 }
 0x3b6   : > { %v1903_v42 = vpop.trf.xlu0 }
 0x3b7   : > { %1951 = vst.msk [vmem:[%s2929_s30 + $0x28] sm:$0xff] %vm345_vm6, %v1903_v42  ;;  %v1935_v43 = vpop.trf.xlu1 }
 0x3b8   : > { %1967 = vst.msk [vmem:[%s2929_s30 + $0xa8] sm:$0xff] %vm345_vm6, %v1935_v43 }
 0x3ba   : > { %v1904_v44 = vpop.trf.xlu0 }
 0x3bb   : > { %1952 = vst.msk [vmem:[%s2929_s30 + $0x30] sm:$0xff] %vm345_vm6, %v1904_v44  ;;  %v1936_v45 = vpop.trf.xlu1 }
 0x3bc   : > { %1968 = vst.msk [vmem:[%s2929_s30 + $0xb0] sm:$0xff] %vm345_vm6, %v1936_v45 }
 0x3be   : > { %v1905_v46 = vpop.trf.xlu0 }
 0x3bf   : > { %1953 = vst.msk [vmem:[%s2929_s30 + $0x38] sm:$0xff] %vm345_vm6, %v1905_v46  ;;  %v1937_v47 = vpop.trf.xlu1 }
 0x3c0   : > { %1969 = vst.msk [vmem:[%s2929_s30 + $0xb8] sm:$0xff] %vm345_vm6, %v1937_v47 }
 0x3c2   : > { %v1906_v48 = vpop.trf.xlu0 }
 0x3c3   : > { %1954 = vst.msk [vmem:[%s2929_s30 + $0x40] sm:$0xff] %vm345_vm6, %v1906_v48  ;;  %v1938_v23 = vpop.trf.xlu1 }
 0x3c4   : > { %1970 = vst.msk [vmem:[%s2929_s30 + $0xc0] sm:$0xff] %vm345_vm6, %v1938_v23 }
 0x3c6   : > { %v1907_v24 = vpop.trf.xlu0 }
 0x3c7   : > { %1955 = vst.msk [vmem:[%s2929_s30 + $0x48] sm:$0xff] %vm345_vm6, %v1907_v24  ;;  %v1939_v49 = vpop.trf.xlu1 }
 0x3c8   : > { %1971 = vst.msk [vmem:[%s2929_s30 + $0xc8] sm:$0xff] %vm345_vm6, %v1939_v49 }
 0x3ca   : > { %v1908_v50 = vpop.trf.xlu0 }
 0x3cb   : > { %1956 = vst.msk [vmem:[%s2929_s30 + $0x50] sm:$0xff] %vm345_vm6, %v1908_v50  ;;  %v1940_v51 = vpop.trf.xlu1 }
 0x3cc   : > { %1972 = vst.msk [vmem:[%s2929_s30 + $0xd0] sm:$0xff] %vm345_vm6, %v1940_v51 }
 0x3ce   : > { %v1909_v54 = vpop.trf.xlu0 }
 0x3cf   : > { %1957 = vst.msk [vmem:[%s2929_s30 + $0x58] sm:$0xff] %vm345_vm6, %v1909_v54  ;;  %v1941_v56 = vpop.trf.xlu1 }
 0x3d0   : > { %1973 = vst.msk [vmem:[%s2929_s30 + $0xd8] sm:$0xff] %vm345_vm6, %v1941_v56 }
 0x3d2   : > { %v1910_v58 = vpop.trf.xlu0 }
 0x3d3   : > { %1958 = vst.msk [vmem:[%s2929_s30 + $0x60] sm:$0xff] %vm345_vm6, %v1910_v58  ;;  %v1942_v59 = vpop.trf.xlu1 }
 0x3d4   : > { %1974 = vst.msk [vmem:[%s2929_s30 + $0xe0] sm:$0xff] %vm345_vm6, %v1942_v59 }
 0x3d6   : > { %v1911_v60 = vpop.trf.xlu0 }
 0x3d7   : > { %1959 = vst.msk [vmem:[%s2929_s30 + $0x68] sm:$0xff] %vm345_vm6, %v1911_v60  ;;  %v1943_v61 = vpop.trf.xlu1 }
 0x3d8   : > { %1975 = vst.msk [vmem:[%s2929_s30 + $0xe8] sm:$0xff] %vm345_vm6, %v1943_v61 }
 0x3da   : > { %v1912_v62 = vpop.trf.xlu0 }
 0x3db   : > { %1960 = vst.msk [vmem:[%s2929_s30 + $0x70] sm:$0xff] %vm345_vm6, %v1912_v62  ;;  %v1944_v63 = vpop.trf.xlu1 }
 0x3dc   : > { %1976 = vst.msk [vmem:[%s2929_s30 + $0xf0] sm:$0xff] %vm345_vm6, %v1944_v63 }
 0x3de   : > { %v1913_v0 = vpop.trf.xlu0 }
 0x3df   : > { %1961 = vst.msk [vmem:[%s2929_s30 + $0x78] sm:$0xff] %vm345_vm6, %v1913_v0  ;;  %v1945_v2 = vpop.trf.xlu1 }
 0x3e0   : > { %1977 = vst.msk [vmem:[%s2929_s30 + $0xf8] sm:$0xff] %vm345_vm6, %v1945_v2 }
 0x3e1 PF: > { %s17_s20 = sadd.s32 1, %s2693_s20   ;;  %s3018_s18 = smov %s2689_s19 }
 0x3e2   : > { %p14_p6 = scmp.ge.s32.totalorder %s17_s20, 4   ;;  %s3019_s19 = smov %s3021_s22 }
 0x3e4   :  { %16 = sbr.rel (!%p14_p6) target bundleno = 3 (0x3), region = 88 }
 0x3eb   :  { %2005 = vsyncpa [#allocation4], 1 }
 0x3ec   :  { %2007 = vsyncpa [#allocation4 + $0x1], 1 }
 0x3ed   :  { %2008 = vsyncpa [#allocation6], 1 }

</bundles_post_ra>
